<compile_context>
chip_gen: v6e
topology: v6e:2x2x1
jax: 0.10.0
libtpu: 0.0.40
codegen_flags: <defaults>
</compile_context>

<pallas_src>
import jax
import jax.numpy as jnp
from jax import lax
from jax.experimental import pallas as pl
from jax.experimental.pallas import tpu as pltpu

BN_EPS = 1e-5


def _make_kernel(H, W, B_blk, Cin):
    HW = H * W

    def kernel(x_ref, w_ref, b_ref, mask_ref,
               wdn_ref, bdn_ref, wupt_ref, bup_ref, o_ref, xs_ref):
        """B_blk images per grid step (NCHW kept, spatial flattened to lanes).

        x_ref    : (B_blk, Cin, H*W)   flattened input images (lane-dense)
        w_ref    : (Cout, 9*Cin)       reparameterized 3x3 weights (tap-major)
        b_ref    : (Cout, 1)           fused bias (all folded BN branches)
        mask_ref : (9, H*W)            per-tap zero-padding border masks (f32)
        wdn_ref  : (Cout, Cint)        SE down weight
        bdn_ref  : (1, Cint)           SE down bias
        wupt_ref : (Cout, Cint)        SE up weight (transposed)
        bup_ref  : (Cout, 1)           SE up bias
        o_ref    : (B_blk, Cout, H*W)  output images
        xs_ref   : (9*Cin, B_blk*H*W)  VMEM im2col scratch (compute dtype)
        """
        cdt = xs_ref.dtype
        masks = mask_ref[...]                               # (9, HW), f32

        # im2col by lane rotation: tap (dh, dw) of image b is
        # roll(x_b, shift=-(dh*W + dw)) with out-of-image positions zeroed by
        # the per-tap border mask (this also kills the cyclic wrap-around).
        for b in range(B_blk):
            xb = x_ref[b]                                   # (Cin, HW), lane-dense
            t = 0
            for dh in (-1, 0, 1):
                for dw in (-1, 0, 1):
                    d = dh * W + dw
                    if d == 0:
                        tap = xb                            # center tap: no mask
                    else:
                        tap = pltpu.roll(xb, shift=(-d) % HW, axis=1)
                        tap = tap * masks[t:t + 1, :]       # f32 VPU masking
                    xs_ref[t * Cin:(t + 1) * Cin,
                           b * HW:(b + 1) * HW] = tap.astype(cdt)
                    t += 1

        # Fused (3x3 + 1x1 + identity) conv for the whole batch block:
        # one MXU matmul, K = 9*Cin, N = B_blk*HW, f32 accumulation.
        out = jnp.dot(w_ref[...], xs_ref[...], preferred_element_type=jnp.float32)
        out = jnp.maximum(out + b_ref[...], 0.0)            # fused bias + ReLU

        # post_se: SEBlock(Cout, Cout//4), per image.  Global avg pool + two
        # tiny FCs via broadcast-multiply + reductions (no 1-wide matmuls).
        inv_hw = 1.0 / HW
        for b in range(B_blk):
            seg = out[:, b * HW:(b + 1) * HW]                          # (Cout, HW)
            pooled = jnp.sum(seg, axis=1, keepdims=True) * inv_hw      # (Cout, 1)
            hid = jnp.sum(pooled * wdn_ref[...], axis=0, keepdims=True)  # (1, Cint)
            hid = jnp.maximum(hid + bdn_ref[...], 0.0)
            gate = jnp.sum(hid * wupt_ref[...], axis=1, keepdims=True)   # (Cout, 1)
            gate = jax.nn.sigmoid(gate + bup_ref[...])
            o_ref[b] = (seg * gate).astype(o_ref.dtype)

    return kernel


def _fold_bn(gamma, beta, mean, var):
    scale = gamma * lax.rsqrt(var + BN_EPS)
    return scale, beta - mean * scale                       # (C,), (C,)


def _pick_batch_block(N, Cin, Cout, HW, compute_itemsize,
                      budget_bytes=16 << 20, max_block=4):
    """Largest divisor of N whose per-step VMEM footprint fits the budget."""
    per_img = HW * (2 * Cin * 4              # double-buffered input block (f32)
                    + 2 * Cout * 4           # double-buffered output block
                    + 9 * Cin * compute_itemsize   # im2col scratch
                    + 2 * Cin * 4)           # live tap / roll temporaries
    cap = int(max(1, min(budget_bytes // max(per_img, 1), max_block, N)))
    for b in range(cap, 0, -1):
        if N % b == 0:
            return b
    return 1


def repvggplus_block(x_nchw, p, *, compute_dtype=jnp.float32,
                     out_dtype=jnp.float32):
    """NCHW in / NCHW out.  All branches folded into one 3x3 conv (stride 1)."""
    x = x_nchw.astype(jnp.float32)
    N, Cin, H, W = x.shape
    Cout = p["w1"].shape[1]
    Cint = p["se_wdn"].shape[1]
    HW = H * W

    # Fold each branch's BN (inference), reparameterize into one 3x3 conv.
    sd, bd = _fold_bn(*p["bn_dense"])
    s1, b1 = _fold_bn(*p["bn_1x1"])
    w_eff = p["w3"] * sd[None, None, None, :]               # (3,3,Cin,Cout)
    center = p["w1"] * s1[None, :]                          # (Cin, Cout)
    b_eff = bd + b1
    # Identity-BN branch only exists when Cin == Cout (and stride == 1),
    # matching the PyTorch module's rbr_identity construction.
    if Cin == Cout and "bn_id" in p:
        sid, bid = _fold_bn(*p["bn_id"])
        center = center + jnp.eye(Cin, dtype=jnp.float32) * sid[None, :]
        b_eff = b_eff + bid
    w_eff = w_eff.at[1, 1].add(center)
    w_mat = jnp.transpose(w_eff, (3, 0, 1, 2)).reshape(Cout, 9 * Cin)
    w_mat = w_mat.astype(compute_dtype)
    b_eff = b_eff.reshape(Cout, 1).astype(jnp.float32)

    # Per-tap zero-padding border masks (tiny resident constant).
    q = jnp.arange(HW, dtype=jnp.int32)
    row, col = q // W, q % W
    mrows = []
    for dh in (-1, 0, 1):
        for dw in (-1, 0, 1):
            ok = ((row + dh >= 0) & (row + dh <= H - 1) &
                  (col + dw >= 0) & (col + dw <= W - 1))
            mrows.append(ok)
    masks = jnp.stack(mrows).astype(jnp.float32)            # (9, HW)

    x_flat = x.reshape(N, Cin, HW)                          # free reshape (NCHW kept)

    B_blk = _pick_batch_block(N, Cin, Cout, HW,
                              jnp.dtype(compute_dtype).itemsize)

    def const_spec(shape):
        nd = len(shape)
        return pl.BlockSpec(shape, lambda n, _nd=nd: (0,) * _nd)

    out_flat = pl.pallas_call(
        _make_kernel(H, W, B_blk, Cin),
        out_shape=jax.ShapeDtypeStruct((N, Cout, HW), out_dtype),
        grid_spec=pltpu.PrefetchScalarGridSpec(
            num_scalar_prefetch=0,
            grid=(N // B_blk,),
            in_specs=[
                pl.BlockSpec((B_blk, Cin, HW), lambda n: (n, 0, 0)),
                const_spec((Cout, 9 * Cin)),   # fused 3x3 weights
                const_spec((Cout, 1)),         # fused bias
                const_spec((9, HW)),           # per-tap border masks
                const_spec((Cout, Cint)),      # SE down weight
                const_spec((1, Cint)),         # SE down bias
                const_spec((Cout, Cint)),      # SE up weight (transposed)
                const_spec((Cout, 1)),         # SE up bias
            ],
            out_specs=pl.BlockSpec((B_blk, Cout, HW), lambda n: (n, 0, 0)),
            scratch_shapes=[pltpu.VMEM((9 * Cin, B_blk * HW), compute_dtype)],
        ),
        compiler_params=pltpu.CompilerParams(
            dimension_semantics=("parallel",),
            vmem_limit_bytes=64 * 1024 * 1024),
    )(x_flat, w_mat, b_eff, masks,
      p["se_wdn"].astype(jnp.float32), p["se_bdn"].reshape(1, Cint),
      p["se_wup"].T, p["se_bup"].reshape(Cout, 1))

    return out_flat.reshape(N, Cout, H, W)


def ref_forward(x_nchw, p):
    """Pure-JAX reference (NHWC internally), high precision."""
    x = jnp.transpose(x_nchw, (0, 2, 3, 1)).astype(jnp.float32)

    def bn(y, gamma, beta, mean, var):
        return (y - mean) * gamma * lax.rsqrt(var + BN_EPS) + beta

    dense = lax.conv_general_dilated(
        x, p["w3"], (1, 1), [(1, 1), (1, 1)],
        dimension_numbers=("NHWC", "HWIO", "NHWC"),
        precision=lax.Precision.HIGHEST)
    dense = bn(dense, *p["bn_dense"])

    one = jnp.dot(x, p["w1"], precision=lax.Precision.HIGHEST)
    one = bn(one, *p["bn_1x1"])

    ident = bn(x, *p["bn_id"])

    out = jax.nn.relu(dense + one + ident)

    pooled = jnp.mean(out, axis=(1, 2))                            # (N, Cout)
    hid = jax.nn.relu(jnp.dot(pooled, p["se_wdn"],
                              precision=lax.Precision.HIGHEST) + p["se_bdn"])
    gate = jax.nn.sigmoid(jnp.dot(hid, p["se_wup"],
                                  precision=lax.Precision.HIGHEST) + p["se_bup"])
    out = out * gate[:, None, None, :]
    return jnp.transpose(out, (0, 3, 1, 2))


def init_params(key, cin, cout):
    assert cin == cout, "identity branch requires in_channels == out_channels"
    cint = cout // 4
    ks = jax.random.split(key, 16)

    def bn_params(k):
        k1, k2, k3, k4 = jax.random.split(k, 4)
        gamma = jax.random.uniform(k1, (cout,), jnp.float32, 0.5, 1.5)
        beta = 0.1 * jax.random.normal(k2, (cout,), jnp.float32)
        mean = 0.1 * jax.random.normal(k3, (cout,), jnp.float32)
        var = jax.random.uniform(k4, (cout,), jnp.float32, 0.5, 1.5)
        return (gamma, beta, mean, var)

    return {
        "w3": 0.2 * jax.random.normal(ks[0], (3, 3, cin, cout), jnp.float32),
        "w1": 0.2 * jax.random.normal(ks[1], (cin, cout), jnp.float32),
        "bn_dense": bn_params(ks[2]),
        "bn_1x1": bn_params(ks[3]),
        "bn_id": bn_params(ks[4]),
        "se_wdn": 0.2 * jax.random.normal(ks[5], (cout, cint), jnp.float32),
        "se_bdn": 0.1 * jax.random.normal(ks[6], (cint,), jnp.float32),
        "se_wup": 0.2 * jax.random.normal(ks[7], (cint, cout), jnp.float32),
        "se_bup": 0.1 * jax.random.normal(ks[8], (cout,), jnp.float32),
    }


if __name__ == "__main__":
    key = jax.random.PRNGKey(0)
    kx, kp = jax.random.split(key)

    # NCHW, matches the PyTorch module layout.  N=8 so the batch-blocked grid
    # (B_blk=4) exercises more than one grid step.
    N, C, H, W = 8, 8, 16, 16
    x = jax.random.normal(kx, (N, C, H, W), jnp.float32)
    params = init_params(kp, C, C)

    out = jax.block_until_ready(repvggplus_block(x, params))
    ref = jax.block_until_ready(ref_forward(x, params))

    assert out.shape == (N, C, H, W)
    max_err = float(jnp.max(jnp.abs(out - ref)))
    assert max_err < 1e-3, f"mismatch vs reference: {max_err}"

    print("KERNEL_OK")
</pallas_src>

<mosaic_0001>
module attributes {stable_mosaic.version = 11 : i64} {
  func.func @kernel(%arg0: i32, %arg1: memref<4x8x256xf32, #tpu.memory_space<vmem>>, %arg2: memref<8x72xf32, #tpu.memory_space<vmem>>, %arg3: memref<8x1xf32, #tpu.memory_space<vmem>>, %arg4: memref<9x256xf32, #tpu.memory_space<vmem>>, %arg5: memref<8x2xf32, #tpu.memory_space<vmem>>, %arg6: memref<1x2xf32, #tpu.memory_space<vmem>>, %arg7: memref<8x2xf32, #tpu.memory_space<vmem>>, %arg8: memref<8x1xf32, #tpu.memory_space<vmem>>, %arg9: memref<4x8x256xf32, #tpu.memory_space<vmem>>, %arg10: memref<72x1024xf32, #tpu.memory_space<vmem>>) attributes {dimension_semantics = [#tpu.dimension_semantics<parallel>], iteration_bounds = array<i64: 2>, scalar_prefetch = 0 : i64, scratch_operands = 1 : i64, tpu.core_type = #tpu.core_type<tc>, window_params = [{transform_indices = @transform_0, window_bounds = array<i64: 4, 8, 256>}, {pipeline_mode = #tpu.pipeline_mode<synchronous>, transform_indices = @transform_1, window_bounds = array<i64: 8, 72>}, {pipeline_mode = #tpu.pipeline_mode<synchronous>, transform_indices = @transform_2, window_bounds = array<i64: 8, 1>}, {pipeline_mode = #tpu.pipeline_mode<synchronous>, transform_indices = @transform_3, window_bounds = array<i64: 9, 256>}, {pipeline_mode = #tpu.pipeline_mode<synchronous>, transform_indices = @transform_4, window_bounds = array<i64: 8, 2>}, {pipeline_mode = #tpu.pipeline_mode<synchronous>, transform_indices = @transform_5, window_bounds = array<i64: 1, 2>}, {pipeline_mode = #tpu.pipeline_mode<synchronous>, transform_indices = @transform_6, window_bounds = array<i64: 8, 2>}, {pipeline_mode = #tpu.pipeline_mode<synchronous>, transform_indices = @transform_7, window_bounds = array<i64: 8, 1>}, {transform_indices = @transform_8, window_bounds = array<i64: 4, 8, 256>}]} {
    %c0 = arith.constant 0 : index
    %c0_0 = arith.constant 0 : index
    %0 = vector.load %arg4[%c0, %c0_0] : memref<9x256xf32, #tpu.memory_space<vmem>>, vector<9x256xf32>
    %c0_1 = arith.constant 0 : index
    %c0_2 = arith.constant 0 : index
    %c0_3 = arith.constant 0 : index
    %1 = vector.load %arg1[%c0_1, %c0_2, %c0_3] : memref<4x8x256xf32, #tpu.memory_space<vmem>>, vector<1x8x256xf32>
    %2 = vector.shape_cast %1 : vector<1x8x256xf32> to vector<8x256xf32>
    %c17_i32 = arith.constant 17 : i32
    %3 = tpu.dynamic_rotate %2 by %c17_i32 dim 1 : vector<8x256xf32>, i32 -> vector<8x256xf32>
    %4 = vector.extract_strided_slice %0 {offsets = [0, 0], sizes = [1, 256], strides = [1, 1]} : vector<9x256xf32> to vector<1x256xf32>
    %5 = vector.broadcast %4 : vector<1x256xf32> to vector<8x256xf32>
    %6 = arith.mulf %3, %5 : vector<8x256xf32>
    %c0_4 = arith.constant 0 : index
    %c0_5 = arith.constant 0 : index
    %7 = vector.load %arg10[%c0_4, %c0_5] : memref<72x1024xf32, #tpu.memory_space<vmem>>, vector<8x256xf32>
    tpu.vector_store %arg10[%c0_4, %c0_5], %6 {strides = array<i32>} : memref<72x1024xf32, #tpu.memory_space<vmem>>, vector<8x256xf32>,
    %c16_i32 = arith.constant 16 : i32
    %8 = tpu.dynamic_rotate %2 by %c16_i32 dim 1 : vector<8x256xf32>, i32 -> vector<8x256xf32>
    %9 = vector.extract_strided_slice %0 {offsets = [1, 0], sizes = [1, 256], strides = [1, 1]} : vector<9x256xf32> to vector<1x256xf32>
    %10 = vector.broadcast %9 : vector<1x256xf32> to vector<8x256xf32>
    %11 = arith.mulf %8, %10 : vector<8x256xf32>
    %c8 = arith.constant 8 : index
    %c0_6 = arith.constant 0 : index
    %12 = vector.load %arg10[%c8, %c0_6] : memref<72x1024xf32, #tpu.memory_space<vmem>>, vector<8x256xf32>
    tpu.vector_store %arg10[%c8, %c0_6], %11 {strides = array<i32>} : memref<72x1024xf32, #tpu.memory_space<vmem>>, vector<8x256xf32>,
    %c15_i32 = arith.constant 15 : i32
    %13 = tpu.dynamic_rotate %2 by %c15_i32 dim 1 : vector<8x256xf32>, i32 -> vector<8x256xf32>
    %14 = vector.extract_strided_slice %0 {offsets = [2, 0], sizes = [1, 256], strides = [1, 1]} : vector<9x256xf32> to vector<1x256xf32>
    %15 = vector.broadcast %14 : vector<1x256xf32> to vector<8x256xf32>
    %16 = arith.mulf %13, %15 : vector<8x256xf32>
    %c16 = arith.constant 16 : index
    %c0_7 = arith.constant 0 : index
    %17 = vector.load %arg10[%c16, %c0_7] : memref<72x1024xf32, #tpu.memory_space<vmem>>, vector<8x256xf32>
    tpu.vector_store %arg10[%c16, %c0_7], %16 {strides = array<i32>} : memref<72x1024xf32, #tpu.memory_space<vmem>>, vector<8x256xf32>,
    %c1_i32 = arith.constant 1 : i32
    %18 = tpu.dynamic_rotate %2 by %c1_i32 dim 1 : vector<8x256xf32>, i32 -> vector<8x256xf32>
    %19 = vector.extract_strided_slice %0 {offsets = [3, 0], sizes = [1, 256], strides = [1, 1]} : vector<9x256xf32> to vector<1x256xf32>
    %20 = vector.broadcast %19 : vector<1x256xf32> to vector<8x256xf32>
    %21 = arith.mulf %18, %20 : vector<8x256xf32>
    %c24 = arith.constant 24 : index
    %c0_8 = arith.constant 0 : index
    %22 = vector.load %arg10[%c24, %c0_8] : memref<72x1024xf32, #tpu.memory_space<vmem>>, vector<8x256xf32>
    tpu.vector_store %arg10[%c24, %c0_8], %21 {strides = array<i32>} : memref<72x1024xf32, #tpu.memory_space<vmem>>, vector<8x256xf32>,
    %c32 = arith.constant 32 : index
    %c0_9 = arith.constant 0 : index
    %23 = vector.load %arg10[%c32, %c0_9] : memref<72x1024xf32, #tpu.memory_space<vmem>>, vector<8x256xf32>
    tpu.vector_store %arg10[%c32, %c0_9], %2 {strides = array<i32>} : memref<72x1024xf32, #tpu.memory_space<vmem>>, vector<8x256xf32>,
    %c255_i32 = arith.constant 255 : i32
    %24 = tpu.dynamic_rotate %2 by %c255_i32 dim 1 : vector<8x256xf32>, i32 -> vector<8x256xf32>
    %25 = vector.extract_strided_slice %0 {offsets = [5, 0], sizes = [1, 256], strides = [1, 1]} : vector<9x256xf32> to vector<1x256xf32>
    %26 = vector.broadcast %25 : vector<1x256xf32> to vector<8x256xf32>
    %27 = arith.mulf %24, %26 : vector<8x256xf32>
    %c40 = arith.constant 40 : index
    %c0_10 = arith.constant 0 : index
    %28 = vector.load %arg10[%c40, %c0_10] : memref<72x1024xf32, #tpu.memory_space<vmem>>, vector<8x256xf32>
    tpu.vector_store %arg10[%c40, %c0_10], %27 {strides = array<i32>} : memref<72x1024xf32, #tpu.memory_space<vmem>>, vector<8x256xf32>,
    %c241_i32 = arith.constant 241 : i32
    %29 = tpu.dynamic_rotate %2 by %c241_i32 dim 1 : vector<8x256xf32>, i32 -> vector<8x256xf32>
    %30 = vector.extract_strided_slice %0 {offsets = [6, 0], sizes = [1, 256], strides = [1, 1]} : vector<9x256xf32> to vector<1x256xf32>
    %31 = vector.broadcast %30 : vector<1x256xf32> to vector<8x256xf32>
    %32 = arith.mulf %29, %31 : vector<8x256xf32>
    %c48 = arith.constant 48 : index
    %c0_11 = arith.constant 0 : index
    %33 = vector.load %arg10[%c48, %c0_11] : memref<72x1024xf32, #tpu.memory_space<vmem>>, vector<8x256xf32>
    tpu.vector_store %arg10[%c48, %c0_11], %32 {strides = array<i32>} : memref<72x1024xf32, #tpu.memory_space<vmem>>, vector<8x256xf32>,
    %c240_i32 = arith.constant 240 : i32
    %34 = tpu.dynamic_rotate %2 by %c240_i32 dim 1 : vector<8x256xf32>, i32 -> vector<8x256xf32>
    %35 = vector.extract_strided_slice %0 {offsets = [7, 0], sizes = [1, 256], strides = [1, 1]} : vector<9x256xf32> to vector<1x256xf32>
    %36 = vector.broadcast %35 : vector<1x256xf32> to vector<8x256xf32>
    %37 = arith.mulf %34, %36 : vector<8x256xf32>
    %c56 = arith.constant 56 : index
    %c0_12 = arith.constant 0 : index
    %38 = vector.load %arg10[%c56, %c0_12] : memref<72x1024xf32, #tpu.memory_space<vmem>>, vector<8x256xf32>
    tpu.vector_store %arg10[%c56, %c0_12], %37 {strides = array<i32>} : memref<72x1024xf32, #tpu.memory_space<vmem>>, vector<8x256xf32>,
    %c239_i32 = arith.constant 239 : i32
    %39 = tpu.dynamic_rotate %2 by %c239_i32 dim 1 : vector<8x256xf32>, i32 -> vector<8x256xf32>
    %40 = vector.extract_strided_slice %0 {offsets = [8, 0], sizes = [1, 256], strides = [1, 1]} : vector<9x256xf32> to vector<1x256xf32>
    %41 = vector.broadcast %40 : vector<1x256xf32> to vector<8x256xf32>
    %42 = arith.mulf %39, %41 : vector<8x256xf32>
    %c64 = arith.constant 64 : index
    %c0_13 = arith.constant 0 : index
    %43 = vector.load %arg10[%c64, %c0_13] : memref<72x1024xf32, #tpu.memory_space<vmem>>, vector<8x256xf32>
    tpu.vector_store %arg10[%c64, %c0_13], %42 {strides = array<i32>} : memref<72x1024xf32, #tpu.memory_space<vmem>>, vector<8x256xf32>,
    %c1 = arith.constant 1 : index
    %c0_14 = arith.constant 0 : index
    %c0_15 = arith.constant 0 : index
    %44 = vector.load %arg1[%c1, %c0_14, %c0_15] : memref<4x8x256xf32, #tpu.memory_space<vmem>>, vector<1x8x256xf32>
    %45 = vector.shape_cast %44 : vector<1x8x256xf32> to vector<8x256xf32>
    %c17_i32_16 = arith.constant 17 : i32
    %46 = tpu.dynamic_rotate %45 by %c17_i32_16 dim 1 : vector<8x256xf32>, i32 -> vector<8x256xf32>
    %47 = vector.extract_strided_slice %0 {offsets = [0, 0], sizes = [1, 256], strides = [1, 1]} : vector<9x256xf32> to vector<1x256xf32>
    %48 = vector.broadcast %47 : vector<1x256xf32> to vector<8x256xf32>
    %49 = arith.mulf %46, %48 : vector<8x256xf32>
    %c0_17 = arith.constant 0 : index
    %c256 = arith.constant 256 : index
    %50 = vector.load %arg10[%c0_17, %c256] : memref<72x1024xf32, #tpu.memory_space<vmem>>, vector<8x256xf32>
    tpu.vector_store %arg10[%c0_17, %c256], %49 {strides = array<i32>} : memref<72x1024xf32, #tpu.memory_space<vmem>>, vector<8x256xf32>,
    %c16_i32_18 = arith.constant 16 : i32
    %51 = tpu.dynamic_rotate %45 by %c16_i32_18 dim 1 : vector<8x256xf32>, i32 -> vector<8x256xf32>
    %52 = vector.extract_strided_slice %0 {offsets = [1, 0], sizes = [1, 256], strides = [1, 1]} : vector<9x256xf32> to vector<1x256xf32>
    %53 = vector.broadcast %52 : vector<1x256xf32> to vector<8x256xf32>
    %54 = arith.mulf %51, %53 : vector<8x256xf32>
    %c8_19 = arith.constant 8 : index
    %c256_20 = arith.constant 256 : index
    %55 = vector.load %arg10[%c8_19, %c256_20] : memref<72x1024xf32, #tpu.memory_space<vmem>>, vector<8x256xf32>
    tpu.vector_store %arg10[%c8_19, %c256_20], %54 {strides = array<i32>} : memref<72x1024xf32, #tpu.memory_space<vmem>>, vector<8x256xf32>,
    %c15_i32_21 = arith.constant 15 : i32
    %56 = tpu.dynamic_rotate %45 by %c15_i32_21 dim 1 : vector<8x256xf32>, i32 -> vector<8x256xf32>
    %57 = vector.extract_strided_slice %0 {offsets = [2, 0], sizes = [1, 256], strides = [1, 1]} : vector<9x256xf32> to vector<1x256xf32>
    %58 = vector.broadcast %57 : vector<1x256xf32> to vector<8x256xf32>
    %59 = arith.mulf %56, %58 : vector<8x256xf32>
    %c16_22 = arith.constant 16 : index
    %c256_23 = arith.constant 256 : index
    %60 = vector.load %arg10[%c16_22, %c256_23] : memref<72x1024xf32, #tpu.memory_space<vmem>>, vector<8x256xf32>
    tpu.vector_store %arg10[%c16_22, %c256_23], %59 {strides = array<i32>} : memref<72x1024xf32, #tpu.memory_space<vmem>>, vector<8x256xf32>,
    %c1_i32_24 = arith.constant 1 : i32
    %61 = tpu.dynamic_rotate %45 by %c1_i32_24 dim 1 : vector<8x256xf32>, i32 -> vector<8x256xf32>
    %62 = vector.extract_strided_slice %0 {offsets = [3, 0], sizes = [1, 256], strides = [1, 1]} : vector<9x256xf32> to vector<1x256xf32>
    %63 = vector.broadcast %62 : vector<1x256xf32> to vector<8x256xf32>
    %64 = arith.mulf %61, %63 : vector<8x256xf32>
    %c24_25 = arith.constant 24 : index
    %c256_26 = arith.constant 256 : index
    %65 = vector.load %arg10[%c24_25, %c256_26] : memref<72x1024xf32, #tpu.memory_space<vmem>>, vector<8x256xf32>
    tpu.vector_store %arg10[%c24_25, %c256_26], %64 {strides = array<i32>} : memref<72x1024xf32, #tpu.memory_space<vmem>>, vector<8x256xf32>,
    %c32_27 = arith.constant 32 : index
    %c256_28 = arith.constant 256 : index
    %66 = vector.load %arg10[%c32_27, %c256_28] : memref<72x1024xf32, #tpu.memory_space<vmem>>, vector<8x256xf32>
    tpu.vector_store %arg10[%c32_27, %c256_28], %45 {strides = array<i32>} : memref<72x1024xf32, #tpu.memory_space<vmem>>, vector<8x256xf32>,
    %c255_i32_29 = arith.constant 255 : i32
    %67 = tpu.dynamic_rotate %45 by %c255_i32_29 dim 1 : vector<8x256xf32>, i32 -> vector<8x256xf32>
    %68 = vector.extract_strided_slice %0 {offsets = [5, 0], sizes = [1, 256], strides = [1, 1]} : vector<9x256xf32> to vector<1x256xf32>
    %69 = vector.broadcast %68 : vector<1x256xf32> to vector<8x256xf32>
    %70 = arith.mulf %67, %69 : vector<8x256xf32>
    %c40_30 = arith.constant 40 : index
    %c256_31 = arith.constant 256 : index
    %71 = vector.load %arg10[%c40_30, %c256_31] : memref<72x1024xf32, #tpu.memory_space<vmem>>, vector<8x256xf32>
    tpu.vector_store %arg10[%c40_30, %c256_31], %70 {strides = array<i32>} : memref<72x1024xf32, #tpu.memory_space<vmem>>, vector<8x256xf32>,
    %c241_i32_32 = arith.constant 241 : i32
    %72 = tpu.dynamic_rotate %45 by %c241_i32_32 dim 1 : vector<8x256xf32>, i32 -> vector<8x256xf32>
    %73 = vector.extract_strided_slice %0 {offsets = [6, 0], sizes = [1, 256], strides = [1, 1]} : vector<9x256xf32> to vector<1x256xf32>
    %74 = vector.broadcast %73 : vector<1x256xf32> to vector<8x256xf32>
    %75 = arith.mulf %72, %74 : vector<8x256xf32>
    %c48_33 = arith.constant 48 : index
    %c256_34 = arith.constant 256 : index
    %76 = vector.load %arg10[%c48_33, %c256_34] : memref<72x1024xf32, #tpu.memory_space<vmem>>, vector<8x256xf32>
    tpu.vector_store %arg10[%c48_33, %c256_34], %75 {strides = array<i32>} : memref<72x1024xf32, #tpu.memory_space<vmem>>, vector<8x256xf32>,
    %c240_i32_35 = arith.constant 240 : i32
    %77 = tpu.dynamic_rotate %45 by %c240_i32_35 dim 1 : vector<8x256xf32>, i32 -> vector<8x256xf32>
    %78 = vector.extract_strided_slice %0 {offsets = [7, 0], sizes = [1, 256], strides = [1, 1]} : vector<9x256xf32> to vector<1x256xf32>
    %79 = vector.broadcast %78 : vector<1x256xf32> to vector<8x256xf32>
    %80 = arith.mulf %77, %79 : vector<8x256xf32>
    %c56_36 = arith.constant 56 : index
    %c256_37 = arith.constant 256 : index
    %81 = vector.load %arg10[%c56_36, %c256_37] : memref<72x1024xf32, #tpu.memory_space<vmem>>, vector<8x256xf32>
    tpu.vector_store %arg10[%c56_36, %c256_37], %80 {strides = array<i32>} : memref<72x1024xf32, #tpu.memory_space<vmem>>, vector<8x256xf32>,
    %c239_i32_38 = arith.constant 239 : i32
    %82 = tpu.dynamic_rotate %45 by %c239_i32_38 dim 1 : vector<8x256xf32>, i32 -> vector<8x256xf32>
    %83 = vector.extract_strided_slice %0 {offsets = [8, 0], sizes = [1, 256], strides = [1, 1]} : vector<9x256xf32> to vector<1x256xf32>
    %84 = vector.broadcast %83 : vector<1x256xf32> to vector<8x256xf32>
    %85 = arith.mulf %82, %84 : vector<8x256xf32>
    %c64_39 = arith.constant 64 : index
    %c256_40 = arith.constant 256 : index
    %86 = vector.load %arg10[%c64_39, %c256_40] : memref<72x1024xf32, #tpu.memory_space<vmem>>, vector<8x256xf32>
    tpu.vector_store %arg10[%c64_39, %c256_40], %85 {strides = array<i32>} : memref<72x1024xf32, #tpu.memory_space<vmem>>, vector<8x256xf32>,
    %c2 = arith.constant 2 : index
    %c0_41 = arith.constant 0 : index
    %c0_42 = arith.constant 0 : index
    %87 = vector.load %arg1[%c2, %c0_41, %c0_42] : memref<4x8x256xf32, #tpu.memory_space<vmem>>, vector<1x8x256xf32>
    %88 = vector.shape_cast %87 : vector<1x8x256xf32> to vector<8x256xf32>
    %c17_i32_43 = arith.constant 17 : i32
    %89 = tpu.dynamic_rotate %88 by %c17_i32_43 dim 1 : vector<8x256xf32>, i32 -> vector<8x256xf32>
    %90 = vector.extract_strided_slice %0 {offsets = [0, 0], sizes = [1, 256], strides = [1, 1]} : vector<9x256xf32> to vector<1x256xf32>
    %91 = vector.broadcast %90 : vector<1x256xf32> to vector<8x256xf32>
    %92 = arith.mulf %89, %91 : vector<8x256xf32>
    %c0_44 = arith.constant 0 : index
    %c512 = arith.constant 512 : index
    %93 = vector.load %arg10[%c0_44, %c512] : memref<72x1024xf32, #tpu.memory_space<vmem>>, vector<8x256xf32>
    tpu.vector_store %arg10[%c0_44, %c512], %92 {strides = array<i32>} : memref<72x1024xf32, #tpu.memory_space<vmem>>, vector<8x256xf32>,
    %c16_i32_45 = arith.constant 16 : i32
    %94 = tpu.dynamic_rotate %88 by %c16_i32_45 dim 1 : vector<8x256xf32>, i32 -> vector<8x256xf32>
    %95 = vector.extract_strided_slice %0 {offsets = [1, 0], sizes = [1, 256], strides = [1, 1]} : vector<9x256xf32> to vector<1x256xf32>
    %96 = vector.broadcast %95 : vector<1x256xf32> to vector<8x256xf32>
    %97 = arith.mulf %94, %96 : vector<8x256xf32>
    %c8_46 = arith.constant 8 : index
    %c512_47 = arith.constant 512 : index
    %98 = vector.load %arg10[%c8_46, %c512_47] : memref<72x1024xf32, #tpu.memory_space<vmem>>, vector<8x256xf32>
    tpu.vector_store %arg10[%c8_46, %c512_47], %97 {strides = array<i32>} : memref<72x1024xf32, #tpu.memory_space<vmem>>, vector<8x256xf32>,
    %c15_i32_48 = arith.constant 15 : i32
    %99 = tpu.dynamic_rotate %88 by %c15_i32_48 dim 1 : vector<8x256xf32>, i32 -> vector<8x256xf32>
    %100 = vector.extract_strided_slice %0 {offsets = [2, 0], sizes = [1, 256], strides = [1, 1]} : vector<9x256xf32> to vector<1x256xf32>
    %101 = vector.broadcast %100 : vector<1x256xf32> to vector<8x256xf32>
    %102 = arith.mulf %99, %101 : vector<8x256xf32>
    %c16_49 = arith.constant 16 : index
    %c512_50 = arith.constant 512 : index
    %103 = vector.load %arg10[%c16_49, %c512_50] : memref<72x1024xf32, #tpu.memory_space<vmem>>, vector<8x256xf32>
    tpu.vector_store %arg10[%c16_49, %c512_50], %102 {strides = array<i32>} : memref<72x1024xf32, #tpu.memory_space<vmem>>, vector<8x256xf32>,
    %c1_i32_51 = arith.constant 1 : i32
    %104 = tpu.dynamic_rotate %88 by %c1_i32_51 dim 1 : vector<8x256xf32>, i32 -> vector<8x256xf32>
    %105 = vector.extract_strided_slice %0 {offsets = [3, 0], sizes = [1, 256], strides = [1, 1]} : vector<9x256xf32> to vector<1x256xf32>
    %106 = vector.broadcast %105 : vector<1x256xf32> to vector<8x256xf32>
    %107 = arith.mulf %104, %106 : vector<8x256xf32>
    %c24_52 = arith.constant 24 : index
    %c512_53 = arith.constant 512 : index
    %108 = vector.load %arg10[%c24_52, %c512_53] : memref<72x1024xf32, #tpu.memory_space<vmem>>, vector<8x256xf32>
    tpu.vector_store %arg10[%c24_52, %c512_53], %107 {strides = array<i32>} : memref<72x1024xf32, #tpu.memory_space<vmem>>, vector<8x256xf32>,
    %c32_54 = arith.constant 32 : index
    %c512_55 = arith.constant 512 : index
    %109 = vector.load %arg10[%c32_54, %c512_55] : memref<72x1024xf32, #tpu.memory_space<vmem>>, vector<8x256xf32>
    tpu.vector_store %arg10[%c32_54, %c512_55], %88 {strides = array<i32>} : memref<72x1024xf32, #tpu.memory_space<vmem>>, vector<8x256xf32>,
    %c255_i32_56 = arith.constant 255 : i32
    %110 = tpu.dynamic_rotate %88 by %c255_i32_56 dim 1 : vector<8x256xf32>, i32 -> vector<8x256xf32>
    %111 = vector.extract_strided_slice %0 {offsets = [5, 0], sizes = [1, 256], strides = [1, 1]} : vector<9x256xf32> to vector<1x256xf32>
    %112 = vector.broadcast %111 : vector<1x256xf32> to vector<8x256xf32>
    %113 = arith.mulf %110, %112 : vector<8x256xf32>
    %c40_57 = arith.constant 40 : index
    %c512_58 = arith.constant 512 : index
    %114 = vector.load %arg10[%c40_57, %c512_58] : memref<72x1024xf32, #tpu.memory_space<vmem>>, vector<8x256xf32>
    tpu.vector_store %arg10[%c40_57, %c512_58], %113 {strides = array<i32>} : memref<72x1024xf32, #tpu.memory_space<vmem>>, vector<8x256xf32>,
    %c241_i32_59 = arith.constant 241 : i32
    %115 = tpu.dynamic_rotate %88 by %c241_i32_59 dim 1 : vector<8x256xf32>, i32 -> vector<8x256xf32>
    %116 = vector.extract_strided_slice %0 {offsets = [6, 0], sizes = [1, 256], strides = [1, 1]} : vector<9x256xf32> to vector<1x256xf32>
    %117 = vector.broadcast %116 : vector<1x256xf32> to vector<8x256xf32>
    %118 = arith.mulf %115, %117 : vector<8x256xf32>
    %c48_60 = arith.constant 48 : index
    %c512_61 = arith.constant 512 : index
    %119 = vector.load %arg10[%c48_60, %c512_61] : memref<72x1024xf32, #tpu.memory_space<vmem>>, vector<8x256xf32>
    tpu.vector_store %arg10[%c48_60, %c512_61], %118 {strides = array<i32>} : memref<72x1024xf32, #tpu.memory_space<vmem>>, vector<8x256xf32>,
    %c240_i32_62 = arith.constant 240 : i32
    %120 = tpu.dynamic_rotate %88 by %c240_i32_62 dim 1 : vector<8x256xf32>, i32 -> vector<8x256xf32>
    %121 = vector.extract_strided_slice %0 {offsets = [7, 0], sizes = [1, 256], strides = [1, 1]} : vector<9x256xf32> to vector<1x256xf32>
    %122 = vector.broadcast %121 : vector<1x256xf32> to vector<8x256xf32>
    %123 = arith.mulf %120, %122 : vector<8x256xf32>
    %c56_63 = arith.constant 56 : index
    %c512_64 = arith.constant 512 : index
    %124 = vector.load %arg10[%c56_63, %c512_64] : memref<72x1024xf32, #tpu.memory_space<vmem>>, vector<8x256xf32>
    tpu.vector_store %arg10[%c56_63, %c512_64], %123 {strides = array<i32>} : memref<72x1024xf32, #tpu.memory_space<vmem>>, vector<8x256xf32>,
    %c239_i32_65 = arith.constant 239 : i32
    %125 = tpu.dynamic_rotate %88 by %c239_i32_65 dim 1 : vector<8x256xf32>, i32 -> vector<8x256xf32>
    %126 = vector.extract_strided_slice %0 {offsets = [8, 0], sizes = [1, 256], strides = [1, 1]} : vector<9x256xf32> to vector<1x256xf32>
    %127 = vector.broadcast %126 : vector<1x256xf32> to vector<8x256xf32>
    %128 = arith.mulf %125, %127 : vector<8x256xf32>
    %c64_66 = arith.constant 64 : index
    %c512_67 = arith.constant 512 : index
    %129 = vector.load %arg10[%c64_66, %c512_67] : memref<72x1024xf32, #tpu.memory_space<vmem>>, vector<8x256xf32>
    tpu.vector_store %arg10[%c64_66, %c512_67], %128 {strides = array<i32>} : memref<72x1024xf32, #tpu.memory_space<vmem>>, vector<8x256xf32>,
    %c3 = arith.constant 3 : index
    %c0_68 = arith.constant 0 : index
    %c0_69 = arith.constant 0 : index
    %130 = vector.load %arg1[%c3, %c0_68, %c0_69] : memref<4x8x256xf32, #tpu.memory_space<vmem>>, vector<1x8x256xf32>
    %131 = vector.shape_cast %130 : vector<1x8x256xf32> to vector<8x256xf32>
    %c17_i32_70 = arith.constant 17 : i32
    %132 = tpu.dynamic_rotate %131 by %c17_i32_70 dim 1 : vector<8x256xf32>, i32 -> vector<8x256xf32>
    %133 = vector.extract_strided_slice %0 {offsets = [0, 0], sizes = [1, 256], strides = [1, 1]} : vector<9x256xf32> to vector<1x256xf32>
    %134 = vector.broadcast %133 : vector<1x256xf32> to vector<8x256xf32>
    %135 = arith.mulf %132, %134 : vector<8x256xf32>
    %c0_71 = arith.constant 0 : index
    %c768 = arith.constant 768 : index
    %136 = vector.load %arg10[%c0_71, %c768] : memref<72x1024xf32, #tpu.memory_space<vmem>>, vector<8x256xf32>
    tpu.vector_store %arg10[%c0_71, %c768], %135 {strides = array<i32>} : memref<72x1024xf32, #tpu.memory_space<vmem>>, vector<8x256xf32>,
    %c16_i32_72 = arith.constant 16 : i32
    %137 = tpu.dynamic_rotate %131 by %c16_i32_72 dim 1 : vector<8x256xf32>, i32 -> vector<8x256xf32>
    %138 = vector.extract_strided_slice %0 {offsets = [1, 0], sizes = [1, 256], strides = [1, 1]} : vector<9x256xf32> to vector<1x256xf32>
    %139 = vector.broadcast %138 : vector<1x256xf32> to vector<8x256xf32>
    %140 = arith.mulf %137, %139 : vector<8x256xf32>
    %c8_73 = arith.constant 8 : index
    %c768_74 = arith.constant 768 : index
    %141 = vector.load %arg10[%c8_73, %c768_74] : memref<72x1024xf32, #tpu.memory_space<vmem>>, vector<8x256xf32>
    tpu.vector_store %arg10[%c8_73, %c768_74], %140 {strides = array<i32>} : memref<72x1024xf32, #tpu.memory_space<vmem>>, vector<8x256xf32>,
    %c15_i32_75 = arith.constant 15 : i32
    %142 = tpu.dynamic_rotate %131 by %c15_i32_75 dim 1 : vector<8x256xf32>, i32 -> vector<8x256xf32>
    %143 = vector.extract_strided_slice %0 {offsets = [2, 0], sizes = [1, 256], strides = [1, 1]} : vector<9x256xf32> to vector<1x256xf32>
    %144 = vector.broadcast %143 : vector<1x256xf32> to vector<8x256xf32>
    %145 = arith.mulf %142, %144 : vector<8x256xf32>
    %c16_76 = arith.constant 16 : index
    %c768_77 = arith.constant 768 : index
    %146 = vector.load %arg10[%c16_76, %c768_77] : memref<72x1024xf32, #tpu.memory_space<vmem>>, vector<8x256xf32>
    tpu.vector_store %arg10[%c16_76, %c768_77], %145 {strides = array<i32>} : memref<72x1024xf32, #tpu.memory_space<vmem>>, vector<8x256xf32>,
    %c1_i32_78 = arith.constant 1 : i32
    %147 = tpu.dynamic_rotate %131 by %c1_i32_78 dim 1 : vector<8x256xf32>, i32 -> vector<8x256xf32>
    %148 = vector.extract_strided_slice %0 {offsets = [3, 0], sizes = [1, 256], strides = [1, 1]} : vector<9x256xf32> to vector<1x256xf32>
    %149 = vector.broadcast %148 : vector<1x256xf32> to vector<8x256xf32>
    %150 = arith.mulf %147, %149 : vector<8x256xf32>
    %c24_79 = arith.constant 24 : index
    %c768_80 = arith.constant 768 : index
    %151 = vector.load %arg10[%c24_79, %c768_80] : memref<72x1024xf32, #tpu.memory_space<vmem>>, vector<8x256xf32>
    tpu.vector_store %arg10[%c24_79, %c768_80], %150 {strides = array<i32>} : memref<72x1024xf32, #tpu.memory_space<vmem>>, vector<8x256xf32>,
    %c32_81 = arith.constant 32 : index
    %c768_82 = arith.constant 768 : index
    %152 = vector.load %arg10[%c32_81, %c768_82] : memref<72x1024xf32, #tpu.memory_space<vmem>>, vector<8x256xf32>
    tpu.vector_store %arg10[%c32_81, %c768_82], %131 {strides = array<i32>} : memref<72x1024xf32, #tpu.memory_space<vmem>>, vector<8x256xf32>,
    %c255_i32_83 = arith.constant 255 : i32
    %153 = tpu.dynamic_rotate %131 by %c255_i32_83 dim 1 : vector<8x256xf32>, i32 -> vector<8x256xf32>
    %154 = vector.extract_strided_slice %0 {offsets = [5, 0], sizes = [1, 256], strides = [1, 1]} : vector<9x256xf32> to vector<1x256xf32>
    %155 = vector.broadcast %154 : vector<1x256xf32> to vector<8x256xf32>
    %156 = arith.mulf %153, %155 : vector<8x256xf32>
    %c40_84 = arith.constant 40 : index
    %c768_85 = arith.constant 768 : index
    %157 = vector.load %arg10[%c40_84, %c768_85] : memref<72x1024xf32, #tpu.memory_space<vmem>>, vector<8x256xf32>
    tpu.vector_store %arg10[%c40_84, %c768_85], %156 {strides = array<i32>} : memref<72x1024xf32, #tpu.memory_space<vmem>>, vector<8x256xf32>,
    %c241_i32_86 = arith.constant 241 : i32
    %158 = tpu.dynamic_rotate %131 by %c241_i32_86 dim 1 : vector<8x256xf32>, i32 -> vector<8x256xf32>
    %159 = vector.extract_strided_slice %0 {offsets = [6, 0], sizes = [1, 256], strides = [1, 1]} : vector<9x256xf32> to vector<1x256xf32>
    %160 = vector.broadcast %159 : vector<1x256xf32> to vector<8x256xf32>
    %161 = arith.mulf %158, %160 : vector<8x256xf32>
    %c48_87 = arith.constant 48 : index
    %c768_88 = arith.constant 768 : index
    %162 = vector.load %arg10[%c48_87, %c768_88] : memref<72x1024xf32, #tpu.memory_space<vmem>>, vector<8x256xf32>
    tpu.vector_store %arg10[%c48_87, %c768_88], %161 {strides = array<i32>} : memref<72x1024xf32, #tpu.memory_space<vmem>>, vector<8x256xf32>,
    %c240_i32_89 = arith.constant 240 : i32
    %163 = tpu.dynamic_rotate %131 by %c240_i32_89 dim 1 : vector<8x256xf32>, i32 -> vector<8x256xf32>
    %164 = vector.extract_strided_slice %0 {offsets = [7, 0], sizes = [1, 256], strides = [1, 1]} : vector<9x256xf32> to vector<1x256xf32>
    %165 = vector.broadcast %164 : vector<1x256xf32> to vector<8x256xf32>
    %166 = arith.mulf %163, %165 : vector<8x256xf32>
    %c56_90 = arith.constant 56 : index
    %c768_91 = arith.constant 768 : index
    %167 = vector.load %arg10[%c56_90, %c768_91] : memref<72x1024xf32, #tpu.memory_space<vmem>>, vector<8x256xf32>
    tpu.vector_store %arg10[%c56_90, %c768_91], %166 {strides = array<i32>} : memref<72x1024xf32, #tpu.memory_space<vmem>>, vector<8x256xf32>,
    %c239_i32_92 = arith.constant 239 : i32
    %168 = tpu.dynamic_rotate %131 by %c239_i32_92 dim 1 : vector<8x256xf32>, i32 -> vector<8x256xf32>
    %169 = vector.extract_strided_slice %0 {offsets = [8, 0], sizes = [1, 256], strides = [1, 1]} : vector<9x256xf32> to vector<1x256xf32>
    %170 = vector.broadcast %169 : vector<1x256xf32> to vector<8x256xf32>
    %171 = arith.mulf %168, %170 : vector<8x256xf32>
    %c64_93 = arith.constant 64 : index
    %c768_94 = arith.constant 768 : index
    %172 = vector.load %arg10[%c64_93, %c768_94] : memref<72x1024xf32, #tpu.memory_space<vmem>>, vector<8x256xf32>
    tpu.vector_store %arg10[%c64_93, %c768_94], %171 {strides = array<i32>} : memref<72x1024xf32, #tpu.memory_space<vmem>>, vector<8x256xf32>,
    %c0_95 = arith.constant 0 : index
    %c0_96 = arith.constant 0 : index
    %173 = vector.load %arg2[%c0_95, %c0_96] : memref<8x72xf32, #tpu.memory_space<vmem>>, vector<8x72xf32>
    %c0_97 = arith.constant 0 : index
    %c0_98 = arith.constant 0 : index
    %174 = vector.load %arg10[%c0_97, %c0_98] : memref<72x1024xf32, #tpu.memory_space<vmem>>, vector<72x1024xf32>
    %cst = arith.constant dense<0.000000e+00> : vector<8x1024xf32>
    %175 = tpu.matmul %173, %174, %cst {dimension_numbers = #tpu.dot_dimension_numbers<[1], [0], [0], [1], [0, 0, 1, 1], [], []>} : vector<8x72xf32>, vector<72x1024xf32>, vector<8x1024xf32> -> vector<8x1024xf32>
    %c0_99 = arith.constant 0 : index
    %c0_100 = arith.constant 0 : index
    %176 = vector.load %arg3[%c0_99, %c0_100] : memref<8x1xf32, #tpu.memory_space<vmem>>, vector<8x1xf32>
    %177 = vector.broadcast %176 : vector<8x1xf32> to vector<8x1024xf32>
    %178 = arith.addf %175, %177 : vector<8x1024xf32>
    %cst_101 = arith.constant 0.000000e+00 : f32
    %179 = vector.broadcast %cst_101 : f32 to vector<8x1024xf32>
    %180 = arith.maximumf %178, %179 : vector<8x1024xf32>
    %181 = vector.extract_strided_slice %180 {offsets = [0, 0], sizes = [8, 256], strides = [1, 1]} : vector<8x1024xf32> to vector<8x256xf32>
    %cst_102 = arith.constant dense<0.000000e+00> : vector<8xf32>
    %182 = vector.multi_reduction <add>, %181, %cst_102 [1] : vector<8x256xf32> to vector<8xf32>
    %183 = vector.shape_cast %182 : vector<8xf32> to vector<8x1xf32>
    %cst_103 = arith.constant 3.906250e-03 : f32
    %184 = vector.broadcast %cst_103 : f32 to vector<8x1xf32>
    %185 = arith.mulf %183, %184 : vector<8x1xf32>
    %c0_104 = arith.constant 0 : index
    %c0_105 = arith.constant 0 : index
    %186 = vector.load %arg5[%c0_104, %c0_105] : memref<8x2xf32, #tpu.memory_space<vmem>>, vector<8x2xf32>
    %187 = vector.broadcast %185 : vector<8x1xf32> to vector<8x2xf32>
    %188 = arith.mulf %187, %186 : vector<8x2xf32>
    %cst_106 = arith.constant dense<0.000000e+00> : vector<2xf32>
    %189 = vector.multi_reduction <add>, %188, %cst_106 [0] : vector<8x2xf32> to vector<2xf32>
    %190 = vector.shape_cast %189 : vector<2xf32> to vector<1x2xf32>
    %c0_107 = arith.constant 0 : index
    %c0_108 = arith.constant 0 : index
    %191 = vector.load %arg6[%c0_107, %c0_108] : memref<1x2xf32, #tpu.memory_space<vmem>>, vector<1x2xf32>
    %192 = arith.addf %190, %191 : vector<1x2xf32>
    %cst_109 = arith.constant 0.000000e+00 : f32
    %193 = vector.broadcast %cst_109 : f32 to vector<1x2xf32>
    %194 = arith.maximumf %192, %193 : vector<1x2xf32>
    %c0_110 = arith.constant 0 : index
    %c0_111 = arith.constant 0 : index
    %195 = vector.load %arg7[%c0_110, %c0_111] : memref<8x2xf32, #tpu.memory_space<vmem>>, vector<8x2xf32>
    %196 = vector.broadcast %194 : vector<1x2xf32> to vector<8x2xf32>
    %197 = arith.mulf %196, %195 : vector<8x2xf32>
    %cst_112 = arith.constant dense<0.000000e+00> : vector<8xf32>
    %198 = vector.multi_reduction <add>, %197, %cst_112 [1] : vector<8x2xf32> to vector<8xf32>
    %199 = vector.shape_cast %198 : vector<8xf32> to vector<8x1xf32>
    %c0_113 = arith.constant 0 : index
    %c0_114 = arith.constant 0 : index
    %200 = vector.load %arg8[%c0_113, %c0_114] : memref<8x1xf32, #tpu.memory_space<vmem>>, vector<8x1xf32>
    %201 = arith.addf %199, %200 : vector<8x1xf32>
    %202 = arith.negf %201 : vector<8x1xf32>
    %203 = math.exp %202 : vector<8x1xf32>
    %cst_115 = arith.constant 1.000000e+00 : f32
    %204 = vector.broadcast %cst_115 : f32 to vector<8x1xf32>
    %205 = arith.addf %204, %203 : vector<8x1xf32>
    %206 = arith.divf %204, %205 : vector<8x1xf32>
    %207 = vector.broadcast %206 : vector<8x1xf32> to vector<8x256xf32>
    %208 = arith.mulf %181, %207 : vector<8x256xf32>
    %c0_116 = arith.constant 0 : index
    %c0_117 = arith.constant 0 : index
    %c0_118 = arith.constant 0 : index
    %209 = vector.load %arg9[%c0_116, %c0_117, %c0_118] : memref<4x8x256xf32, #tpu.memory_space<vmem>>, vector<1x8x256xf32>
    %210 = vector.shape_cast %209 : vector<1x8x256xf32> to vector<8x256xf32>
    %211 = vector.shape_cast %208 : vector<8x256xf32> to vector<1x8x256xf32>
    tpu.vector_store %arg9[%c0_116, %c0_117, %c0_118], %211 {strides = array<i32>} : memref<4x8x256xf32, #tpu.memory_space<vmem>>, vector<1x8x256xf32>,
    %212 = vector.extract_strided_slice %180 {offsets = [0, 256], sizes = [8, 256], strides = [1, 1]} : vector<8x1024xf32> to vector<8x256xf32>
    %cst_119 = arith.constant dense<0.000000e+00> : vector<8xf32>
    %213 = vector.multi_reduction <add>, %212, %cst_119 [1] : vector<8x256xf32> to vector<8xf32>
    %214 = vector.shape_cast %213 : vector<8xf32> to vector<8x1xf32>
    %cst_120 = arith.constant 3.906250e-03 : f32
    %215 = vector.broadcast %cst_120 : f32 to vector<8x1xf32>
    %216 = arith.mulf %214, %215 : vector<8x1xf32>
    %c0_121 = arith.constant 0 : index
    %c0_122 = arith.constant 0 : index
    %217 = vector.load %arg5[%c0_121, %c0_122] : memref<8x2xf32, #tpu.memory_space<vmem>>, vector<8x2xf32>
    %218 = vector.broadcast %216 : vector<8x1xf32> to vector<8x2xf32>
    %219 = arith.mulf %218, %217 : vector<8x2xf32>
    %cst_123 = arith.constant dense<0.000000e+00> : vector<2xf32>
    %220 = vector.multi_reduction <add>, %219, %cst_123 [0] : vector<8x2xf32> to vector<2xf32>
    %221 = vector.shape_cast %220 : vector<2xf32> to vector<1x2xf32>
    %c0_124 = arith.constant 0 : index
    %c0_125 = arith.constant 0 : index
    %222 = vector.load %arg6[%c0_124, %c0_125] : memref<1x2xf32, #tpu.memory_space<vmem>>, vector<1x2xf32>
    %223 = arith.addf %221, %222 : vector<1x2xf32>
    %cst_126 = arith.constant 0.000000e+00 : f32
    %224 = vector.broadcast %cst_126 : f32 to vector<1x2xf32>
    %225 = arith.maximumf %223, %224 : vector<1x2xf32>
    %c0_127 = arith.constant 0 : index
    %c0_128 = arith.constant 0 : index
    %226 = vector.load %arg7[%c0_127, %c0_128] : memref<8x2xf32, #tpu.memory_space<vmem>>, vector<8x2xf32>
    %227 = vector.broadcast %225 : vector<1x2xf32> to vector<8x2xf32>
    %228 = arith.mulf %227, %226 : vector<8x2xf32>
    %cst_129 = arith.constant dense<0.000000e+00> : vector<8xf32>
    %229 = vector.multi_reduction <add>, %228, %cst_129 [1] : vector<8x2xf32> to vector<8xf32>
    %230 = vector.shape_cast %229 : vector<8xf32> to vector<8x1xf32>
    %c0_130 = arith.constant 0 : index
    %c0_131 = arith.constant 0 : index
    %231 = vector.load %arg8[%c0_130, %c0_131] : memref<8x1xf32, #tpu.memory_space<vmem>>, vector<8x1xf32>
    %232 = arith.addf %230, %231 : vector<8x1xf32>
    %233 = arith.negf %232 : vector<8x1xf32>
    %234 = math.exp %233 : vector<8x1xf32>
    %cst_132 = arith.constant 1.000000e+00 : f32
    %235 = vector.broadcast %cst_132 : f32 to vector<8x1xf32>
    %236 = arith.addf %235, %234 : vector<8x1xf32>
    %237 = arith.divf %235, %236 : vector<8x1xf32>
    %238 = vector.broadcast %237 : vector<8x1xf32> to vector<8x256xf32>
    %239 = arith.mulf %212, %238 : vector<8x256xf32>
    %c1_133 = arith.constant 1 : index
    %c0_134 = arith.constant 0 : index
    %c0_135 = arith.constant 0 : index
    %240 = vector.load %arg9[%c1_133, %c0_134, %c0_135] : memref<4x8x256xf32, #tpu.memory_space<vmem>>, vector<1x8x256xf32>
    %241 = vector.shape_cast %240 : vector<1x8x256xf32> to vector<8x256xf32>
    %242 = vector.shape_cast %239 : vector<8x256xf32> to vector<1x8x256xf32>
    tpu.vector_store %arg9[%c1_133, %c0_134, %c0_135], %242 {strides = array<i32>} : memref<4x8x256xf32, #tpu.memory_space<vmem>>, vector<1x8x256xf32>,
    %243 = vector.extract_strided_slice %180 {offsets = [0, 512], sizes = [8, 256], strides = [1, 1]} : vector<8x1024xf32> to vector<8x256xf32>
    %cst_136 = arith.constant dense<0.000000e+00> : vector<8xf32>
    %244 = vector.multi_reduction <add>, %243, %cst_136 [1] : vector<8x256xf32> to vector<8xf32>
    %245 = vector.shape_cast %244 : vector<8xf32> to vector<8x1xf32>
    %cst_137 = arith.constant 3.906250e-03 : f32
    %246 = vector.broadcast %cst_137 : f32 to vector<8x1xf32>
    %247 = arith.mulf %245, %246 : vector<8x1xf32>
    %c0_138 = arith.constant 0 : index
    %c0_139 = arith.constant 0 : index
    %248 = vector.load %arg5[%c0_138, %c0_139] : memref<8x2xf32, #tpu.memory_space<vmem>>, vector<8x2xf32>
    %249 = vector.broadcast %247 : vector<8x1xf32> to vector<8x2xf32>
    %250 = arith.mulf %249, %248 : vector<8x2xf32>
    %cst_140 = arith.constant dense<0.000000e+00> : vector<2xf32>
    %251 = vector.multi_reduction <add>, %250, %cst_140 [0] : vector<8x2xf32> to vector<2xf32>
    %252 = vector.shape_cast %251 : vector<2xf32> to vector<1x2xf32>
    %c0_141 = arith.constant 0 : index
    %c0_142 = arith.constant 0 : index
    %253 = vector.load %arg6[%c0_141, %c0_142] : memref<1x2xf32, #tpu.memory_space<vmem>>, vector<1x2xf32>
    %254 = arith.addf %252, %253 : vector<1x2xf32>
    %cst_143 = arith.constant 0.000000e+00 : f32
    %255 = vector.broadcast %cst_143 : f32 to vector<1x2xf32>
    %256 = arith.maximumf %254, %255 : vector<1x2xf32>
    %c0_144 = arith.constant 0 : index
    %c0_145 = arith.constant 0 : index
    %257 = vector.load %arg7[%c0_144, %c0_145] : memref<8x2xf32, #tpu.memory_space<vmem>>, vector<8x2xf32>
    %258 = vector.broadcast %256 : vector<1x2xf32> to vector<8x2xf32>
    %259 = arith.mulf %258, %257 : vector<8x2xf32>
    %cst_146 = arith.constant dense<0.000000e+00> : vector<8xf32>
    %260 = vector.multi_reduction <add>, %259, %cst_146 [1] : vector<8x2xf32> to vector<8xf32>
    %261 = vector.shape_cast %260 : vector<8xf32> to vector<8x1xf32>
    %c0_147 = arith.constant 0 : index
    %c0_148 = arith.constant 0 : index
    %262 = vector.load %arg8[%c0_147, %c0_148] : memref<8x1xf32, #tpu.memory_space<vmem>>, vector<8x1xf32>
    %263 = arith.addf %261, %262 : vector<8x1xf32>
    %264 = arith.negf %263 : vector<8x1xf32>
    %265 = math.exp %264 : vector<8x1xf32>
    %cst_149 = arith.constant 1.000000e+00 : f32
    %266 = vector.broadcast %cst_149 : f32 to vector<8x1xf32>
    %267 = arith.addf %266, %265 : vector<8x1xf32>
    %268 = arith.divf %266, %267 : vector<8x1xf32>
    %269 = vector.broadcast %268 : vector<8x1xf32> to vector<8x256xf32>
    %270 = arith.mulf %243, %269 : vector<8x256xf32>
    %c2_150 = arith.constant 2 : index
    %c0_151 = arith.constant 0 : index
    %c0_152 = arith.constant 0 : index
    %271 = vector.load %arg9[%c2_150, %c0_151, %c0_152] : memref<4x8x256xf32, #tpu.memory_space<vmem>>, vector<1x8x256xf32>
    %272 = vector.shape_cast %271 : vector<1x8x256xf32> to vector<8x256xf32>
    %273 = vector.shape_cast %270 : vector<8x256xf32> to vector<1x8x256xf32>
    tpu.vector_store %arg9[%c2_150, %c0_151, %c0_152], %273 {strides = array<i32>} : memref<4x8x256xf32, #tpu.memory_space<vmem>>, vector<1x8x256xf32>,
    %274 = vector.extract_strided_slice %180 {offsets = [0, 768], sizes = [8, 256], strides = [1, 1]} : vector<8x1024xf32> to vector<8x256xf32>
    %cst_153 = arith.constant dense<0.000000e+00> : vector<8xf32>
    %275 = vector.multi_reduction <add>, %274, %cst_153 [1] : vector<8x256xf32> to vector<8xf32>
    %276 = vector.shape_cast %275 : vector<8xf32> to vector<8x1xf32>
    %cst_154 = arith.constant 3.906250e-03 : f32
    %277 = vector.broadcast %cst_154 : f32 to vector<8x1xf32>
    %278 = arith.mulf %276, %277 : vector<8x1xf32>
    %c0_155 = arith.constant 0 : index
    %c0_156 = arith.constant 0 : index
    %279 = vector.load %arg5[%c0_155, %c0_156] : memref<8x2xf32, #tpu.memory_space<vmem>>, vector<8x2xf32>
    %280 = vector.broadcast %278 : vector<8x1xf32> to vector<8x2xf32>
    %281 = arith.mulf %280, %279 : vector<8x2xf32>
    %cst_157 = arith.constant dense<0.000000e+00> : vector<2xf32>
    %282 = vector.multi_reduction <add>, %281, %cst_157 [0] : vector<8x2xf32> to vector<2xf32>
    %283 = vector.shape_cast %282 : vector<2xf32> to vector<1x2xf32>
    %c0_158 = arith.constant 0 : index
    %c0_159 = arith.constant 0 : index
    %284 = vector.load %arg6[%c0_158, %c0_159] : memref<1x2xf32, #tpu.memory_space<vmem>>, vector<1x2xf32>
    %285 = arith.addf %283, %284 : vector<1x2xf32>
    %cst_160 = arith.constant 0.000000e+00 : f32
    %286 = vector.broadcast %cst_160 : f32 to vector<1x2xf32>
    %287 = arith.maximumf %285, %286 : vector<1x2xf32>
    %c0_161 = arith.constant 0 : index
    %c0_162 = arith.constant 0 : index
    %288 = vector.load %arg7[%c0_161, %c0_162] : memref<8x2xf32, #tpu.memory_space<vmem>>, vector<8x2xf32>
    %289 = vector.broadcast %287 : vector<1x2xf32> to vector<8x2xf32>
    %290 = arith.mulf %289, %288 : vector<8x2xf32>
    %cst_163 = arith.constant dense<0.000000e+00> : vector<8xf32>
    %291 = vector.multi_reduction <add>, %290, %cst_163 [1] : vector<8x2xf32> to vector<8xf32>
    %292 = vector.shape_cast %291 : vector<8xf32> to vector<8x1xf32>
    %c0_164 = arith.constant 0 : index
    %c0_165 = arith.constant 0 : index
    %293 = vector.load %arg8[%c0_164, %c0_165] : memref<8x1xf32, #tpu.memory_space<vmem>>, vector<8x1xf32>
    %294 = arith.addf %292, %293 : vector<8x1xf32>
    %295 = arith.negf %294 : vector<8x1xf32>
    %296 = math.exp %295 : vector<8x1xf32>
    %cst_166 = arith.constant 1.000000e+00 : f32
    %297 = vector.broadcast %cst_166 : f32 to vector<8x1xf32>
    %298 = arith.addf %297, %296 : vector<8x1xf32>
    %299 = arith.divf %297, %298 : vector<8x1xf32>
    %300 = vector.broadcast %299 : vector<8x1xf32> to vector<8x256xf32>
    %301 = arith.mulf %274, %300 : vector<8x256xf32>
    %c3_167 = arith.constant 3 : index
    %c0_168 = arith.constant 0 : index
    %c0_169 = arith.constant 0 : index
    %302 = vector.load %arg9[%c3_167, %c0_168, %c0_169] : memref<4x8x256xf32, #tpu.memory_space<vmem>>, vector<1x8x256xf32>
    %303 = vector.shape_cast %302 : vector<1x8x256xf32> to vector<8x256xf32>
    %304 = vector.shape_cast %301 : vector<8x256xf32> to vector<1x8x256xf32>
    tpu.vector_store %arg9[%c3_167, %c0_168, %c0_169], %304 {strides = array<i32>} : memref<4x8x256xf32, #tpu.memory_space<vmem>>, vector<1x8x256xf32>,
    return
  }
  func.func @transform_0(%arg0: i32) -> (i32, i32, i32) {
    %c0_i32 = arith.constant 0 : i32
    %c0_i32_0 = arith.constant 0 : i32
    %c0_i32_1 = arith.constant 0 : i32
    return %arg0, %c0_i32, %c0_i32_0 : i32, i32, i32
  }
  func.func @transform_1(%arg0: i32) -> (i32, i32) {
    %c0_i32 = arith.constant 0 : i32
    %c0_i32_0 = arith.constant 0 : i32
    %c0_i32_1 = arith.constant 0 : i32
    return %c0_i32, %c0_i32_0 : i32, i32
  }
  func.func @transform_2(%arg0: i32) -> (i32, i32) {
    %c0_i32 = arith.constant 0 : i32
    %c0_i32_0 = arith.constant 0 : i32
    %c0_i32_1 = arith.constant 0 : i32
    return %c0_i32, %c0_i32_0 : i32, i32
  }
  func.func @transform_3(%arg0: i32) -> (i32, i32) {
    %c0_i32 = arith.constant 0 : i32
    %c0_i32_0 = arith.constant 0 : i32
    %c0_i32_1 = arith.constant 0 : i32
    return %c0_i32, %c0_i32_0 : i32, i32
  }
  func.func @transform_4(%arg0: i32) -> (i32, i32) {
    %c0_i32 = arith.constant 0 : i32
    %c0_i32_0 = arith.constant 0 : i32
    %c0_i32_1 = arith.constant 0 : i32
    return %c0_i32, %c0_i32_0 : i32, i32
  }
  func.func @transform_5(%arg0: i32) -> (i32, i32) {
    %c0_i32 = arith.constant 0 : i32
    %c0_i32_0 = arith.constant 0 : i32
    %c0_i32_1 = arith.constant 0 : i32
    return %c0_i32, %c0_i32_0 : i32, i32
  }
  func.func @transform_6(%arg0: i32) -> (i32, i32) {
    %c0_i32 = arith.constant 0 : i32
    %c0_i32_0 = arith.constant 0 : i32
    %c0_i32_1 = arith.constant 0 : i32
    return %c0_i32, %c0_i32_0 : i32, i32
  }
  func.func @transform_7(%arg0: i32) -> (i32, i32) {
    %c0_i32 = arith.constant 0 : i32
    %c0_i32_0 = arith.constant 0 : i32
    %c0_i32_1 = arith.constant 0 : i32
    return %c0_i32, %c0_i32_0 : i32, i32
  }
  func.func @transform_8(%arg0: i32) -> (i32, i32, i32) {
    %c0_i32 = arith.constant 0 : i32
    %c0_i32_0 = arith.constant 0 : i32
    %c0_i32_1 = arith.constant 0 : i32
    return %arg0, %c0_i32, %c0_i32_0 : i32, i32, i32
  }
}

</mosaic_0001>

<bundles_post_ra>
// kernel: tpu_custom_call.1
= control target key start
LH: loop header
LB: loop body
LE: loop exit
PB: predicated region body
PF: predicated region fallthrough
CT: control target
= control target key end

     0   :  { %13 = vsyncpa [#allocation4], 0  ;;  %s2359_s0 = inlined_call_operand.hbm [shape: f32[8,8,256], index: 0, kind: input, shape index: {}]   ;;  %s2360_s1 = inlined_call_operand.vmem [shape: f32[8,72], index: 1, kind: input, shape index: {}]   ;;  %s2361_s2 = inlined_call_operand.vmem [shape: f32[8,1], index: 2, kind: input, shape index: {}]   ;;  %s2362_s3 = inlined_call_operand.vmem [shape: f32[9,256], index: 3, kind: input, shape index: {}]   ;;  %s2363_s4 = inlined_call_operand.vmem [shape: f32[8,2], index: 4, kind: input, shape index: {}]   ;;  %s2364_s5 = inlined_call_operand.vmem [shape: f32[1,2], index: 5, kind: input, shape index: {}]   ;;  %s2365_s6 = inlined_call_operand.vmem [shape: f32[8,2], index: 6, kind: input, shape index: {}]   ;;  %s2366_s7 = inlined_call_operand.vmem [shape: f32[8,1], index: 7, kind: input, shape index: {}]   ;;  %s2367_s8 = inlined_call_operand.hbm [shape: f32[8,8,256], index: 8, kind: output, shape index: {}]  }
   0x1   :  { %15 = vsyncpa [#allocation4 + $0x1], 0 }
   0x2   :  { %16 = vsyncpa [#allocation5], 0 }
   0x3   :  { %18 = vsyncpa [#allocation5 + $0x1], 0  ;;  %s1652_s27 = smov 0   ;;  %s1654_s28 = smov 0  }
   0x4   :  { %s1656_s29 = smov 0   ;;  %s1658_s30 = smov 0  }
   0x5 LB: > { %s1673_s9 = sadd.s32 4294967295, %s1590_s30   ;;  %s1379_s10 = sadd.s32 4294967294, %s1590_s30   ;;  %s1590_s30 = sphi %s1658_s30, %s2384_s30   ;;  %s1586_s29 = sphi %s1656_s29, %s2383_s29   ;;  %s1582_s28 = sphi %s1654_s28, %s2382_s28   ;;  %s1578_s27 = sphi %s1652_s27, %s2381_s27  }
   0x6   : > { %s1677_s11 = sadd.s32 1, %s1590_s30   ;;  %s31_s12 = sadd.s32 1, %s1586_s29 }
   0x7   : > { %s28_s13 = ssub.s32 %s1590_s30, %s1677_s11  ;;  %p38_p0 = scmp.ne.s32.totalorder %s1586_s29, %s1582_s28 }
   0x8   : > { %p29_p1 = scmp.eq.s32.totalorder %s28_s13, 0  ;;  %p39_p2 = scmp.eq.s32.totalorder %s1590_s30, 0 }
   0x9   : > { %p44_p3 = scmp.ne.s32.totalorder %s1582_s28, %s1578_s27  ;;  %p45_p4 = scmp.eq.s32.totalorder %s1673_s9, 0 }
   0xa   : > { %s1689_s14 = scalar_select %p29_p1, %s1586_s29, %s31_s12  }
   0xb   : > { %p1691_p5 = por %p39_p2, %p38_p0  ;;  %p1695_p6 = por %p45_p4, %p44_p3 }
   0xc   : > { %2370 = sst [smem:[#allocation9_spill]] %s1689_s14  ;;  %p215_p7 = scmp.eq.s32.totalorder %s1673_s9, 1 }
   0xd   : > { %s2372_s16 = scalar_select %p1695_p6, 1, 0 }
   0xe   : > { %p221_p8 = scmp.eq.s32.totalorder %s1379_s10, 1  ;;  %p1433_p10 = scmp.lt.s32.totalorder %s1590_s30, 2 }
   0xf   : > { %p1702_p11 = por %p215_p7, %p38_p0  ;;  %s262_s19 = sand.u32 1, %s1586_s29  }
  0x10   : > { %p1706_p12 = por %p221_p8, %p44_p3  ;;  %s1418_s20 = sshll.u32 %s1590_s30, 10 }
  0x11   : > { %s2373_s17 = scalar_select %p1702_p11, 1, 0 }
  0x12   : > { %s2374_s18 = scalar_select %p1706_p12, 1, 0 }
  0x13   : > { %s1382_s21 = sshll.u32 %s262_s19, 6  ;;  %s1715_s24 = scalar_lea.hbm %s2359_s0, %s1418_s20 }
  0x14   : > { %s266_s25 = scalar_lea.vmem [#allocation3], %s1382_s21  ;;  %p1719_p13 = pnand %p1433_p10, %p1691_p5 }
  0x15   : > { %s274_s26 = sshll.u32 %s266_s25, 4  ;;  %s1725_s12 = scalar_lea.sflag [#allocation4], %s262_s19  ;;  %s1723_s26 = int_to_ptr.vmem [resolvable:$true] %s274_s26 }
  0x16   : > { %s1498_s13 = scalar_lea.hbm %s1715_s24, 1024  ;;  %p1500_p1 = pneg %p1719_p13 }
  0x17   : > { %p1499_p0 = scmp.ne.s32.totalorder %s1715_s24, %s1498_s13  ;;  %s1503_s21 = scalar_lea.hbm %s2359_s0, 2048 }
  0x18   : > { %p1504_p4 = scmp.lt.s32.totalorder %s1715_s24, %s2359_s0  ;;  %p1505_p5 = scmp.lt.s32.totalorder %s1503_s21, %s1498_s13 }
  0x19   : > { %p1501_p2 = pnand %p1500_p1, %p1499_p0 }
  0x1a   : > { %p1506_p7 = por %p1505_p5, %p1504_p4 }
  0x1b   : > { %p1502_p3 = pneg %p1501_p2 }
  0x1d   : > { %p1507_p8 = pnand %p1506_p7, %p1502_p3 }
  0x1f   : > { %1510 = shalt.err (!%p1507_p8)
}
  0x20   : > { %s1511_s19 = scalar_lea.vmem %s1723_s26, 1024  ;;  %s1592_s25 = smov [#allocation3]  }
  0x21   : > { %p1512_p10 = scmp.ne.s32.totalorder %s1723_s26, %s1511_s19  ;;  %s1516_s14 = sshll.u32 %s1592_s25, 4  ;;  %s1517_s14 = int_to_ptr.vmem [resolvable:$false] %s1516_s14 }
  0x22   : > { %s1518_s20 = scalar_lea.vmem %s1517_s14, 2048  ;;  %p1519_p2 = scmp.lt.s32.totalorder %s1723_s26, %s1517_s14 }
  0x23   : > { %p1514_p9 = pnand %p1512_p10, %p1500_p1  ;;  %p1520_p12 = scmp.lt.s32.totalorder %s1518_s20, %s1511_s19 }
  0x25   : > { %p1515_p0 = pneg %p1514_p9  ;;  %p1521_p11 = por %p1520_p12, %p1519_p2 }
  0x27   : > { %p1522_p6 = pnand %p1521_p11, %p1515_p0 }
  0x29   : > { %1525 = shalt.err (!%p1522_p6)
}
  0x2a   : > { %s1593_s13 = smov 256   ;;  %s1594_s22 = smov 16  }
  0x2b   : > { %1428 = dma.hbm_to_vmem [thread:$0]  (!%p1719_p13), %s1715_s24, 1024, %s1723_s26, %s1725_s12, %s1593_s13, %s1593_s13, %s1594_s22  }
  0x2c   : > { %p1386_p9 = scmp.ge.s32.totalorder %s1590_s30, 1  ;;  %p282_p1 = scmp.lt.s32.totalorder %s1590_s30, 3 }
  0x2e   : > { %p283_p3 = pnand %p1386_p9, %p282_p1 }
  0x2f   : > { %s1749_s14 = sand.u32 (!%p283_p3), 1, %s1582_s28   ;;  %p2376_p6 = scmp.ne.s32.totalorder (!%p283_p3), %s2372_s16, 0 }
  0x30   : > { %286 = sbr.rel (%p283_p3) target bundleno = 976 (0x3d0), region = 52  ;;  %s1387_s21 = sshll.u32 (!%p283_p3), %s1749_s14, 6 }
  0x31   : > { %s289_s15 = scalar_lea.sflag (!%p283_p3), [#allocation4], %s1749_s14  ;;  %s1755_s23 = scalar_lea.vmem (!%p283_p3), [#allocation3], %s1387_s21 }
  0x35   : > { %1569 = dma.done.wait (%p2376_p6), %s289_s15, 1024  }
  0x36   : > { %1571 = vsyncadd (%p2376_p6), %s289_s15, 4294966272  ;;  %v1762_v0 = vld [vmem:[%s1755_s23 + $0x10] sm:$0xff]  ;;  %v1765_v1 = vld [vmem:[%s1755_s23] sm:$0xff]  ;;  %s1595_s24 = smov 111   ;;  %s1596_s16 = smov 112   ;;  %v1602_v4 = vmov 0.0   ;;  %v337_v9 = vlaneseq }
  0x37   : > { %564 = vrot.lane.b32.xlu1 %v1762_v0, %s1595_s24  ;;  %470 = vrot.lane.b32.xlu0 %v1765_v1, %s1595_s24  ;;  %v1772_v2 = vld [vmem:[%s1755_s23 + $0x18] sm:$0xff]  ;;  %v1775_v3 = vld [vmem:[%s1755_s23 + $0x8] sm:$0xff]  ;;  %s1597_s26 = smov 113   ;;  %s1598_s10 = smov 127   ;;  %v1604_v19 = vmov 0   ;;  %vm823_vm8 = vcmask 588800  }
  0x38   : > { %s1599_s12 = smov 1   ;;  %s1600_s19 = smov 15   ;;  %891 = vmatprep.mubr.f32.mxu0 %v1602_v4  ;;  %962 = vmatprep.mubr.f32.mxu1 %v1602_v4  ;;  %v1840_v5 = vld [vmem:[%s1755_s23 + $0x28] sm:$0xff]  ;;  %v1843_v6 = vld [vmem:[%s1755_s23 + $0x20] sm:$0xff]  ;;  %v1850_v7 = vld [vmem:[%s1755_s23 + $0x38] sm:$0xff]  ;;  %v1899_v10 = vshrl.u32 %v337_v9, 7 }
  0x39   : > { %s1601_s25 = smov 16   ;;  %s1603_s20 = smov 17   ;;  %v1853_v8 = vld [vmem:[%s1755_s23 + $0x30] sm:$0xff]  ;;  %v1905_v11 = vand.u32 127, %v337_v9  ;;  %v1911_v15 = vld [vmem:[%s2362_s3] sm:$0xff]  ;;  %v1916_v16 = vld [vmem:[%s2362_s3 + $0x8] sm:$0xff]  ;;  %1480 = vset.pattern.permute.xlu0 %v1604_v19  ;;  %1481 = vset.pattern.permute.xlu1 %v1604_v19 }
  0x3a   : > { %v460_v14 = vsub.s32 7, %v1899_v10  ;;  %v1926_v17 = vld [vmem:[%s2362_s3 + $0x18] ss:$0 sm:$0xff]  ;;  %v1931_v18 = vld [vmem:[%s2362_s3 + $0x10] ss:$0 sm:$0xff]  ;;  %v441_v38 = vsub.s32 6, %v1899_v10 }
  0x3b   : > { %566 = vrot.lane.b32.xlu1 %v1772_v2, %s1595_s24  ;;  %472 = vrot.lane.b32.xlu0 %v1775_v3, %s1595_s24  ;;  %vm474_vm0 = vcmp.lt.s32.totalorder %v1905_v11, 111  ;;  %vm455_vm1 = vcmp.lt.s32.totalorder %v1905_v11, 112  ;;  %v817_v39 = vld [vmem:[%s2361_s2] sm:$0xff]  ;;  %vm436_vm2 = vcmp.lt.s32.totalorder %v1905_v11, 113  ;;  %v422_v54 = vsub.s32 5, %v1899_v10  ;;  %p2377_p12 = scmp.ne.s32.totalorder %s2373_s17, 0 }
  0x3c   : > { %v1934_v22 = vrot.slane %v1911_v15, %v460_v14  ;;  %v1937_v23 = vrot.slane %v1916_v16, %v460_v14  ;;  %v1978_v46 = vrot.slane %v1911_v15, %v441_v38  ;;  %v1981_v47 = vrot.slane %v1916_v16, %v441_v38 }
  0x3d   : > { %vm417_vm3 = vcmp.lt.s32.totalorder %v1905_v11, 127  ;;  %v1998_v61 = vrot.slane %v1911_v15, %v422_v54  ;;  %v2001_v62 = vrot.slane %v1916_v16, %v422_v54  ;;  %vm396_vm4 = vcmp.lt.s32.totalorder %v1905_v11, 1 }
  0x3e   : > { %vm377_vm5 = vcmp.lt.s32.totalorder %v1905_v11, 15  ;;  %vm358_vm6 = vcmp.lt.s32.totalorder %v1905_v11, 16  ;;  %vm339_vm7 = vcmp.lt.s32.totalorder %v1905_v11, 17  ;;  %vm1125_vm9 = vcmask 15360  }
  0x3f   : > { %453 = vrot.lane.b32.xlu1 %v1775_v3, %s1596_s16  ;;  %451 = vrot.lane.b32.xlu0 %v1765_v1, %s1596_s16 }
  0x43   : > { %556 = vrot.lane.b32.xlu1 %v1772_v2, %s1596_s16  ;;  %554 = vrot.lane.b32.xlu0 %v1762_v0, %s1596_s16 }
  0x47   : > { %434 = vrot.lane.b32.xlu1 %v1775_v3, %s1597_s26  ;;  %432 = vrot.lane.b32.xlu0 %v1765_v1, %s1597_s26 }
  0x4b   : > { %546 = vrot.lane.b32.xlu1 %v1772_v2, %s1597_s26  ;;  %544 = vrot.lane.b32.xlu0 %v1762_v0, %s1597_s26 }
  0x4f   : > { %415 = vrot.lane.b32.xlu1 %v1775_v3, %s1598_s10  ;;  %413 = vrot.lane.b32.xlu0 %v1765_v1, %s1598_s10 }
  0x53   : > { %536 = vrot.lane.b32.xlu1 %v1772_v2, %s1598_s10  ;;  %534 = vrot.lane.b32.xlu0 %v1762_v0, %s1598_s10 }
  0x57   : > { %394 = vrot.lane.b32.xlu1 %v1775_v3, %s1599_s12  ;;  %392 = vrot.lane.b32.xlu0 %v1765_v1, %s1599_s12 }
  0x5b   : > { %524 = vrot.lane.b32.xlu1 %v1772_v2, %s1599_s12  ;;  %522 = vrot.lane.b32.xlu0 %v1762_v0, %s1599_s12 }
  0x5f   : > { %375 = vrot.lane.b32.xlu1 %v1775_v3, %s1600_s19  ;;  %373 = vrot.lane.b32.xlu0 %v1765_v1, %s1600_s19 }
  0x63   : > { %514 = vrot.lane.b32.xlu1 %v1772_v2, %s1600_s19  ;;  %512 = vrot.lane.b32.xlu0 %v1762_v0, %s1600_s19 }
  0x67   : > { %356 = vrot.lane.b32.xlu1 %v1775_v3, %s1601_s25  ;;  %354 = vrot.lane.b32.xlu0 %v1765_v1, %s1601_s25 }
  0x6b   : > { %504 = vrot.lane.b32.xlu1 %v1772_v2, %s1601_s25  ;;  %502 = vrot.lane.b32.xlu0 %v1762_v0, %s1601_s25 }
  0x6f   : > { %335 = vrot.lane.b32.xlu1 %v1775_v3, %s1603_s20  ;;  %333 = vrot.lane.b32.xlu0 %v1765_v1, %s1603_s20 }
  0x73   : > { %494 = vrot.lane.b32.xlu1 %v1772_v2, %s1603_s20  ;;  %492 = vrot.lane.b32.xlu0 %v1762_v0, %s1603_s20 }
  0x77   : > { %651 = vrot.lane.b32.xlu1 %v1840_v5, %s1595_s24  ;;  %649 = vrot.lane.b32.xlu0 %v1843_v6, %s1595_s24 }
  0x7b   : > { %736 = vrot.lane.b32.xlu1 %v1850_v7, %s1595_s24  ;;  %734 = vrot.lane.b32.xlu0 %v1853_v8, %s1595_s24  ;;  %s324_s24 = scalar_lea.vmem [#allocation6], %s1387_s21  ;;  %s1420_s21 = sshll.u32 %s1673_s9, 10 }
  0x7c   : > { %s1292_s9 = scalar_lea.sflag [#allocation5], %s1749_s14 }
  0x7f   : > { %641 = vrot.lane.b32.xlu1 %v1840_v5, %s1596_s16  ;;  %639 = vrot.lane.b32.xlu0 %v1843_v6, %s1596_s16 }
  0x83   : > { %726 = vrot.lane.b32.xlu1 %v1850_v7, %s1596_s16  ;;  %724 = vrot.lane.b32.xlu0 %v1853_v8, %s1596_s16  ;;  %s1306_s16 = sshll.u32 %s324_s24, 4  ;;  %s2306_s16 = int_to_ptr.vmem [resolvable:$true] %s1306_s16 }
  0x87   : > { %631 = vrot.lane.b32.xlu1 %v1840_v5, %s1597_s26  ;;  %629 = vrot.lane.b32.xlu0 %v1843_v6, %s1597_s26 }
  0x8b   : > { %716 = vrot.lane.b32.xlu1 %v1850_v7, %s1597_s26  ;;  %714 = vrot.lane.b32.xlu0 %v1853_v8, %s1597_s26 }
  0x8f   : > { %621 = vrot.lane.b32.xlu1 %v1840_v5, %s1598_s10  ;;  %619 = vrot.lane.b32.xlu0 %v1843_v6, %s1598_s10 }
  0x93   : > { %706 = vrot.lane.b32.xlu1 %v1850_v7, %s1598_s10  ;;  %704 = vrot.lane.b32.xlu0 %v1853_v8, %s1598_s10 }
  0x97   : > { %609 = vrot.lane.b32.xlu1 %v1840_v5, %s1599_s12  ;;  %607 = vrot.lane.b32.xlu0 %v1843_v6, %s1599_s12 }
  0x9b   : > { %694 = vrot.lane.b32.xlu1 %v1850_v7, %s1599_s12  ;;  %692 = vrot.lane.b32.xlu0 %v1853_v8, %s1599_s12  ;;  %s2315_s12 = scalar_lea.hbm %s2367_s8, %s1420_s21 }
  0x9f   : > { %599 = vrot.lane.b32.xlu1 %v1840_v5, %s1600_s19  ;;  %597 = vrot.lane.b32.xlu0 %v1843_v6, %s1600_s19 }
  0xa3   : > { %684 = vrot.lane.b32.xlu1 %v1850_v7, %s1600_s19  ;;  %682 = vrot.lane.b32.xlu0 %v1853_v8, %s1600_s19  ;;  %s1526_s19 = scalar_lea.vmem %s2306_s16, 1024 }
  0xa4   : > { %p1527_p11 = scmp.ne.s32.totalorder %s2306_s16, %s1526_s19 }
  0xa6   : > { %p1528_p13 = pnand %p1527_p11, %p2377_p12 }
  0xa7   : > { %589 = vrot.lane.b32.xlu1 %v1840_v5, %s1601_s25  ;;  %587 = vrot.lane.b32.xlu0 %v1843_v6, %s1601_s25 }
  0xa8   : > { %p1529_p4 = pneg %p1528_p13 }
  0xa9   : > { %v565_v12 = vpop.permute.xlu1 %564  ;;  %v471_v13 = vpop.permute.xlu0 %470 }
  0xab   : > { %674 = vrot.lane.b32.xlu1 %v1850_v7, %s1601_s25  ;;  %672 = vrot.lane.b32.xlu0 %v1853_v8, %s1601_s25 }
  0xad   : > { %v567_v20 = vpop.permute.xlu1 %566  ;;  %v473_v21 = vpop.permute.xlu0 %472 }
  0xae   : > { %v568_v24 = vsel %vm474_vm0, %v565_v12, %v567_v20  ;;  %v475_v25 = vsel %vm474_vm0, %v471_v13, %v473_v21  ;;  %v476_v26 = vsel %vm474_vm0, %v473_v21, %v471_v13  ;;  %v569_v27 = vsel %vm474_vm0, %v567_v20, %v565_v12 }
  0xaf   : > { %579 = vrot.lane.b32.xlu1 %v1840_v5, %s1603_s20  ;;  %577 = vrot.lane.b32.xlu0 %v1843_v6, %s1603_s20  ;;  %v486_v28 = vmul.f32 %v1926_v17, %v476_v26  ;;  %v571_v29 = vmul.f32 %v1926_v17, %v569_v27  ;;  %v485_v30 = vmul.f32 %v1931_v18, %v475_v25  ;;  %v401_v20 = vsub.s32 3, %v1899_v10 }
  0xb0   : > { %v570_v31 = vmul.f32 %v1931_v18, %v568_v24 }
  0xb1   : > { %v454_v32 = vpop.permute.xlu1 %453  ;;  %v452_v33 = vpop.permute.xlu0 %451  ;;  %841 = vmatprep.subr.mxu0 %v486_v28  ;;  %912 = vmatprep.subr.mxu1 %v571_v29  ;;  %v2018_v29 = vrot.slane %v1911_v15, %v401_v20 }
  0xb2   : > { %v456_v34 = vsel %vm455_vm1, %v452_v33, %v454_v32  ;;  %v457_v35 = vsel %vm455_vm1, %v454_v32, %v452_v33  ;;  %842 = vmatpush1.msra.mxu0 %v485_v30  ;;  %913 = vmatpush1.msra.mxu1 %v570_v31  ;;  %v2021_v30 = vrot.slane %v1916_v16, %v401_v20 }
  0xb3   : > { %v466_v36 = vmul.f32 %v1934_v22, %v456_v34  ;;  %v467_v37 = vmul.f32 %v1937_v23, %v457_v35  ;;  %664 = vrot.lane.b32.xlu1 %v1850_v7, %s1603_s20  ;;  %662 = vrot.lane.b32.xlu0 %v1853_v8, %s1603_s20  ;;  %s1605_s20 = smov [#allocation6]  }
  0xb4   : > { %s1530_s13 = sshll.u32 %s1605_s20, 4  ;;  %s1531_s13 = int_to_ptr.vmem [resolvable:$false] %s1530_s13 }
  0xb5   : > { %v557_v40 = vpop.permute.xlu1 %556  ;;  %v555_v41 = vpop.permute.xlu0 %554  ;;  %843 = vmatprep.subr.mxu0 %v467_v37  ;;  %s1532_s22 = scalar_lea.vmem %s1531_s13, 2048  ;;  %p1533_p5 = scmp.lt.s32.totalorder %s2306_s16, %s1531_s13 }
  0xb6   : > { %v558_v42 = vsel %vm455_vm1, %v555_v41, %v557_v40  ;;  %v559_v43 = vsel %vm455_vm1, %v557_v40, %v555_v41  ;;  %844 = vmatpush1.msra.mxu0 %v466_v36  ;;  %p1534_p7 = scmp.lt.s32.totalorder %s1532_s22, %s1526_s19 }
  0xb7   : > { %v560_v44 = vmul.f32 %v558_v42, %v1934_v22  ;;  %v561_v45 = vmul.f32 %v559_v43, %v1937_v23  ;;  %820 = vperm.xlu0 %1480, %v817_v39  }
  0xb8   : > { %p1535_p8 = por %p1534_p7, %p1533_p5 }
  0xb9   : > { %v435_v48 = vpop.permute.xlu1 %434  ;;  %v433_v49 = vpop.permute.xlu0 %432  ;;  %914 = vmatprep.subr.mxu1 %v561_v45 }
  0xba   : > { %v437_v50 = vsel %vm436_vm2, %v433_v49, %v435_v48  ;;  %v438_v51 = vsel %vm436_vm2, %v435_v48, %v433_v49  ;;  %915 = vmatpush1.msra.mxu1 %v560_v44  ;;  %p1536_p10 = pnand %p1535_p8, %p1529_p4 }
  0xbb   : > { %v447_v52 = vmul.f32 %v1978_v46, %v437_v50  ;;  %v448_v53 = vmul.f32 %v1981_v47, %v438_v51  ;;  %v363_v50 = vsub.s32 1, %v1899_v10 }
  0xbd   : > { %v547_v55 = vpop.permute.xlu1 %546  ;;  %v545_v56 = vpop.permute.xlu0 %544  ;;  %845 = vmatprep.subr.mxu0 %v448_v53 }
  0xbe   : > { %v548_v57 = vsel %vm436_vm2, %v545_v56, %v547_v55  ;;  %v549_v58 = vsel %vm436_vm2, %v547_v55, %v545_v56  ;;  %846 = vmatpush1.msra.mxu0 %v447_v52 }
  0xbf   : > { %v550_v59 = vmul.f32 %v548_v57, %v1978_v46  ;;  %v551_v60 = vmul.f32 %v549_v58, %v1981_v47  ;;  %v2062_v57 = vrot.slane %v1911_v15, %v363_v50  ;;  %v2065_v58 = vrot.slane %v1916_v16, %v363_v50 }
  0xc1   : > { %v416_v63 = vpop.permute.xlu1 %415  ;;  %v414_v9 = vpop.permute.xlu0 %413  ;;  %916 = vmatprep.subr.mxu1 %v551_v60 }
  0xc2   : > { %v418_v12 = vsel %vm417_vm3, %v414_v9, %v416_v63  ;;  %v419_v13 = vsel %vm417_vm3, %v416_v63, %v414_v9  ;;  %917 = vmatpush1.msra.mxu1 %v550_v59 }
  0xc3   : > { %v428_v14 = vmul.f32 %v1998_v61, %v418_v12  ;;  %v429_v19 = vmul.f32 %v2001_v62, %v419_v13 }
  0xc5   : > { %v537_v21 = vpop.permute.xlu1 %536  ;;  %v535_v24 = vpop.permute.xlu0 %534  ;;  %847 = vmatprep.subr.mxu0 %v429_v19 }
  0xc6   : > { %v538_v25 = vsel %vm417_vm3, %v535_v24, %v537_v21  ;;  %v539_v26 = vsel %vm417_vm3, %v537_v21, %v535_v24  ;;  %848 = vmatpush1.msra.mxu0 %v428_v14  ;;  %v2074_v14 = vsub.s32 0, %v1899_v10 }
  0xc7   : > { %v540_v27 = vmul.f32 %v538_v25, %v1998_v61  ;;  %v541_v28 = vmul.f32 %v539_v26, %v2001_v62  ;;  %849 = vmatprep.subr.mxu0 %v1775_v3  ;;  %v382_v3 = vsub.s32 2, %v1899_v10 }
  0xc8   : > { %850 = vmatpush1.msra.mxu0 %v1765_v1  ;;  %v2085_v10 = vrot.slane %v1911_v15, %v2074_v14 }
  0xc9   : > { %v395_v31 = vpop.permute.xlu1 %394  ;;  %v393_v32 = vpop.permute.xlu0 %392  ;;  %918 = vmatprep.subr.mxu1 %v541_v28  ;;  %v2042_v41 = vrot.slane %v1911_v15, %v382_v3  ;;  %v2100_v15 = vld [vmem:[%s2360_s1] sm:$0xff] }
  0xca   : > { %v397_v33 = vsel %vm396_vm4, %v393_v32, %v395_v31  ;;  %v398_v34 = vsel %vm396_vm4, %v395_v31, %v393_v32  ;;  %919 = vmatpush1.msra.mxu1 %v540_v27  ;;  %v2089_v27 = vrot.slane %v1916_v16, %v2074_v14 }
  0xcb   : > { %v407_v35 = vmul.f32 %v2018_v29, %v398_v34  ;;  %v408_v36 = vmul.f32 %v2021_v30, %v397_v33  ;;  %920 = vmatprep.subr.mxu1 %v1772_v2 }
  0xcc   : > { %921 = vmatpush1.msra.mxu1 %v1762_v0  ;;  %v2045_v0 = vrot.slane %v1916_v16, %v382_v3 }
  0xcd   : > { %v525_v1 = vpop.permute.xlu1 %524  ;;  %v523_v37 = vpop.permute.xlu0 %522  ;;  %851 = vmatprep.subr.mxu0 %v408_v36 }
  0xce   : > { %v526_v38 = vsel %vm396_vm4, %v523_v37, %v525_v1  ;;  %v527_v39 = vsel %vm396_vm4, %v525_v1, %v523_v37  ;;  %852 = vmatpush1.msra.mxu0 %v407_v35 }
  0xcf   : > { %v528_v40 = vmul.f32 %v527_v39, %v2018_v29  ;;  %v529_v2 = vmul.f32 %v526_v38, %v2021_v30 }
  0xd1   : > { %v376_v42 = vpop.permute.xlu1 %375  ;;  %v374_v43 = vpop.permute.xlu0 %373  ;;  %922 = vmatprep.subr.mxu1 %v529_v2 }
  0xd2   : > { %v378_v44 = vsel %vm377_vm5, %v374_v43, %v376_v42  ;;  %v379_v45 = vsel %vm377_vm5, %v376_v42, %v374_v43  ;;  %923 = vmatpush1.msra.mxu1 %v528_v40 }
  0xd3   : > { %v388_v48 = vmul.f32 %v2042_v41, %v379_v45  ;;  %v389_v49 = vmul.f32 %v2045_v0, %v378_v44 }
  0xd5   : > { %v515_v51 = vpop.permute.xlu1 %514  ;;  %v513_v52 = vpop.permute.xlu0 %512  ;;  %853 = vmatprep.subr.mxu0 %v389_v49 }
  0xd6   : > { %v516_v53 = vsel %vm377_vm5, %v513_v52, %v515_v51  ;;  %v517_v54 = vsel %vm377_vm5, %v515_v51, %v513_v52  ;;  %854 = vmatpush1.msra.mxu0 %v388_v48 }
  0xd7   : > { %v518_v55 = vmul.f32 %v517_v54, %v2042_v41  ;;  %v519_v56 = vmul.f32 %v516_v53, %v2045_v0 }
  0xd9   : > { %v357_v59 = vpop.permute.xlu1 %356  ;;  %v355_v60 = vpop.permute.xlu0 %354  ;;  %924 = vmatprep.subr.mxu1 %v519_v56 }
  0xda   : > { %v359_v63 = vsel %vm358_vm6, %v355_v60, %v357_v59  ;;  %v360_v9 = vsel %vm358_vm6, %v357_v59, %v355_v60  ;;  %925 = vmatpush1.msra.mxu1 %v518_v55 }
  0xdb   : > { %v369_v12 = vmul.f32 %v2062_v57, %v360_v9  ;;  %v370_v13 = vmul.f32 %v2065_v58, %v359_v63 }
  0xdd   : > { %v505_v19 = vpop.permute.xlu1 %504  ;;  %v503_v20 = vpop.permute.xlu0 %502  ;;  %855 = vmatprep.subr.mxu0 %v370_v13 }
  0xde   : > { %v506_v21 = vsel %vm358_vm6, %v503_v20, %v505_v19  ;;  %v507_v24 = vsel %vm358_vm6, %v505_v19, %v503_v20  ;;  %856 = vmatpush1.msra.mxu0 %v369_v12 }
  0xdf   : > { %v508_v25 = vmul.f32 %v507_v24, %v2062_v57  ;;  %v509_v26 = vmul.f32 %v506_v21, %v2065_v58 }
  0xe1   : > { %v336_v28 = vpop.permute.xlu1 %335  ;;  %v334_v31 = vpop.permute.xlu0 %333  ;;  %926 = vmatprep.subr.mxu1 %v509_v26 }
  0xe2   : > { %v340_v32 = vsel %vm339_vm7, %v334_v31, %v336_v28  ;;  %v341_v33 = vsel %vm339_vm7, %v336_v28, %v334_v31  ;;  %927 = vmatpush1.msra.mxu1 %v508_v25 }
  0xe3   : > { %v350_v34 = vmul.f32 %v2085_v10, %v341_v33  ;;  %v351_v35 = vmul.f32 %v2089_v27, %v340_v32 }
  0xe5   : > { %v495_v16 = vpop.permute.xlu1 %494  ;;  %v493_v36 = vpop.permute.xlu0 %492  ;;  %857 = vmatprep.subr.mxu0 %v351_v35 }
  0xe6   : > { %v496_v3 = vsel %vm339_vm7, %v493_v36, %v495_v16  ;;  %v497_v1 = vsel %vm339_vm7, %v495_v16, %v493_v36  ;;  %858 = vmatpush1.msra.mxu0 %v350_v34 }
  0xe7   : > { %v498_v37 = vmul.f32 %v497_v1, %v2085_v10  ;;  %v499_v38 = vmul.f32 %v496_v3, %v2089_v27  ;;  %1397 = vmatmul.mubr.msk.f32.vlgmr.msra.gmra.mxu0 %vm823_vm8, %v2100_v15 }
  0xe8   : > { %1033 = vmatprep.mubr.f32.mxu0 %v1602_v4 }
  0xe9   : > { %v652_v39 = vpop.permute.xlu1 %651  ;;  %v650_v40 = vpop.permute.xlu0 %649  ;;  %928 = vmatprep.subr.mxu1 %v499_v38 }
  0xea   : > { %v653_v2 = vsel %vm474_vm0, %v650_v40, %v652_v39  ;;  %v654_v42 = vsel %vm474_vm0, %v652_v39, %v650_v40  ;;  %929 = vmatpush1.msra.mxu1 %v498_v37 }
  0xeb   : > { %v655_v43 = vmul.f32 %v1931_v18, %v653_v2  ;;  %v656_v44 = vmul.f32 %v1926_v17, %v654_v42  ;;  %1398 = vmatmul.mubr.msk.f32.vlgmr.msra.gmra.mxu1 %vm823_vm8, %v2100_v15 }
  0xec   : > { %1104 = vmatprep.mubr.f32.mxu1 %v1602_v4 }
  0xed   : > { %v737_v45 = vpop.permute.xlu1 %736  ;;  %v735_v48 = vpop.permute.xlu0 %734  ;;  %983 = vmatprep.subr.mxu0 %v656_v44 }
  0xee   : > { %v738_v49 = vsel %vm474_vm0, %v735_v48, %v737_v45  ;;  %v739_v50 = vsel %vm474_vm0, %v737_v45, %v735_v48  ;;  %984 = vmatpush1.msra.mxu0 %v655_v43 }
  0xef   : > { %v740_v51 = vmul.f32 %v1931_v18, %v738_v49  ;;  %v741_v52 = vmul.f32 %v1926_v17, %v739_v50 }
  0xf1   : > { %v642_v53 = vpop.permute.xlu1 %641  ;;  %v640_v54 = vpop.permute.xlu0 %639  ;;  %1054 = vmatprep.subr.mxu1 %v741_v52 }
  0xf2   : > { %v643_v4 = vsel %vm455_vm1, %v640_v54, %v642_v53  ;;  %v644_v55 = vsel %vm455_vm1, %v642_v53, %v640_v54  ;;  %1055 = vmatpush1.msra.mxu1 %v740_v51 }
  0xf3   : > { %v645_v56 = vmul.f32 %v643_v4, %v1934_v22  ;;  %v646_v59 = vmul.f32 %v644_v55, %v1937_v23 }
  0xf5   : > { %v727_v60 = vpop.permute.xlu1 %726  ;;  %v725_v63 = vpop.permute.xlu0 %724  ;;  %985 = vmatprep.subr.mxu0 %v646_v59 }
  0xf6   : > { %v728_v17 = vsel %vm455_vm1, %v725_v63, %v727_v60  ;;  %v729_v18 = vsel %vm455_vm1, %v727_v60, %v725_v63  ;;  %986 = vmatpush1.msra.mxu0 %v645_v56 }
  0xf7   : > { %v730_v9 = vmul.f32 %v728_v17, %v1934_v22  ;;  %v731_v12 = vmul.f32 %v729_v18, %v1937_v23 }
  0xf9   : > { %v632_v13 = vpop.permute.xlu1 %631  ;;  %v630_v19 = vpop.permute.xlu0 %629  ;;  %1056 = vmatprep.subr.mxu1 %v731_v12 }
  0xfa   : > { %v633_v20 = vsel %vm436_vm2, %v630_v19, %v632_v13  ;;  %v634_v21 = vsel %vm436_vm2, %v632_v13, %v630_v19  ;;  %1057 = vmatpush1.msra.mxu1 %v730_v9 }
  0xfb   : > { %v635_v24 = vmul.f32 %v633_v20, %v1978_v46  ;;  %v636_v25 = vmul.f32 %v634_v21, %v1981_v47 }
  0xfd   : > { %v717_v26 = vpop.permute.xlu1 %716  ;;  %v715_v28 = vpop.permute.xlu0 %714  ;;  %987 = vmatprep.subr.mxu0 %v636_v25 }
  0xfe   : > { %v718_v22 = vsel %vm436_vm2, %v715_v28, %v717_v26  ;;  %v719_v23 = vsel %vm436_vm2, %v717_v26, %v715_v28  ;;  %988 = vmatpush1.msra.mxu0 %v635_v24 }
  0xff   : > { %v720_v31 = vmul.f32 %v718_v22, %v1978_v46  ;;  %v721_v32 = vmul.f32 %v719_v23, %v1981_v47 }
 0x101   : > { %v622_v33 = vpop.permute.xlu1 %621  ;;  %v620_v34 = vpop.permute.xlu0 %619  ;;  %1058 = vmatprep.subr.mxu1 %v721_v32 }
 0x102   : > { %v623_v35 = vsel %vm417_vm3, %v620_v34, %v622_v33  ;;  %v624_v16 = vsel %vm417_vm3, %v622_v33, %v620_v34  ;;  %1059 = vmatpush1.msra.mxu1 %v720_v31 }
 0x103   : > { %v625_v36 = vmul.f32 %v623_v35, %v1998_v61  ;;  %v626_v3 = vmul.f32 %v624_v16, %v2001_v62 }
 0x105   : > { %v707_v1 = vpop.permute.xlu1 %706  ;;  %v705_v37 = vpop.permute.xlu0 %704  ;;  %989 = vmatprep.subr.mxu0 %v626_v3 }
 0x106   : > { %v708_v46 = vsel %vm417_vm3, %v705_v37, %v707_v1  ;;  %v709_v47 = vsel %vm417_vm3, %v707_v1, %v705_v37  ;;  %990 = vmatpush1.msra.mxu0 %v625_v36 }
 0x107   : > { %v710_v38 = vmul.f32 %v708_v46, %v1998_v61  ;;  %v711_v39 = vmul.f32 %v709_v47, %v2001_v62  ;;  %991 = vmatprep.subr.mxu0 %v1840_v5 }
 0x108   : > { %992 = vmatpush1.msra.mxu0 %v1843_v6 }
 0x109   : > { %v610_v40 = vpop.permute.xlu1 %609  ;;  %v608_v2 = vpop.permute.xlu0 %607  ;;  %1060 = vmatprep.subr.mxu1 %v711_v39 }
 0x10a   : > { %v611_v42 = vsel %vm396_vm4, %v608_v2, %v610_v40  ;;  %v612_v43 = vsel %vm396_vm4, %v610_v40, %v608_v2  ;;  %1061 = vmatpush1.msra.mxu1 %v710_v38 }
 0x10b   : > { %v613_v44 = vmul.f32 %v612_v43, %v2018_v29  ;;  %v614_v61 = vmul.f32 %v611_v42, %v2021_v30  ;;  %1062 = vmatprep.subr.mxu1 %v1850_v7 }
 0x10c   : > { %1063 = vmatpush1.msra.mxu1 %v1853_v8 }
 0x10d   : > { %v695_v5 = vpop.permute.xlu1 %694  ;;  %v693_v6 = vpop.permute.xlu0 %692  ;;  %993 = vmatprep.subr.mxu0 %v614_v61 }
 0x10e   : > { %v696_v62 = vsel %vm396_vm4, %v693_v6, %v695_v5  ;;  %v697_v45 = vsel %vm396_vm4, %v695_v5, %v693_v6  ;;  %994 = vmatpush1.msra.mxu0 %v613_v44 }
 0x10f   : > { %v698_v48 = vmul.f32 %v697_v45, %v2018_v29  ;;  %v699_v49 = vmul.f32 %v696_v62, %v2021_v30 }
 0x111   : > { %v600_v50 = vpop.permute.xlu1 %599  ;;  %v598_v51 = vpop.permute.xlu0 %597  ;;  %1064 = vmatprep.subr.mxu1 %v699_v49 }
 0x112   : > { %v601_v7 = vsel %vm377_vm5, %v598_v51, %v600_v50  ;;  %v602_v8 = vsel %vm377_vm5, %v600_v50, %v598_v51  ;;  %1065 = vmatpush1.msra.mxu1 %v698_v48 }
 0x113   : > { %v603_v52 = vmul.f32 %v602_v8, %v2042_v41  ;;  %v604_v53 = vmul.f32 %v601_v7, %v2045_v0  ;;  %v1123_v7 = vld [vmem:[%s2363_s4] sm:$0xff] }
 0x115   : > { %v685_v54 = vpop.permute.xlu1 %684  ;;  %v683_v4 = vpop.permute.xlu0 %682  ;;  %995 = vmatprep.subr.mxu0 %v604_v53 }
 0x116   : > { %v686_v29 = vsel %vm377_vm5, %v683_v4, %v685_v54  ;;  %v687_v30 = vsel %vm377_vm5, %v685_v54, %v683_v4  ;;  %996 = vmatpush1.msra.mxu0 %v603_v52 }
 0x117   : > { %v688_v55 = vmul.f32 %v687_v30, %v2042_v41  ;;  %v689_v56 = vmul.f32 %v686_v29, %v2045_v0 }
 0x119   : > { %v590_v59 = vpop.permute.xlu1 %589  ;;  %v588_v60 = vpop.permute.xlu0 %587  ;;  %1066 = vmatprep.subr.mxu1 %v689_v56 }
 0x11a   : > { %v591_v63 = vsel %vm358_vm6, %v588_v60, %v590_v59  ;;  %v592_v17 = vsel %vm358_vm6, %v590_v59, %v588_v60  ;;  %1067 = vmatpush1.msra.mxu1 %v688_v55 }
 0x11b   : > { %v593_v18 = vmul.f32 %v592_v17, %v2062_v57  ;;  %v594_v9 = vmul.f32 %v591_v63, %v2065_v58 }
 0x11d   : > { %v675_v12 = vpop.permute.xlu1 %674  ;;  %v673_v13 = vpop.permute.xlu0 %672  ;;  %997 = vmatprep.subr.mxu0 %v594_v9 }
 0x11e   : > { %v676_v41 = vsel %vm358_vm6, %v673_v13, %v675_v12  ;;  %v677_v0 = vsel %vm358_vm6, %v675_v12, %v673_v13  ;;  %998 = vmatpush1.msra.mxu0 %v593_v18  ;;  %v1133_v13 = vld [vmem:[%s2364_s5] sm:$0x1] }
 0x11f   : > { %v678_v19 = vmul.f32 %v677_v0, %v2062_v57  ;;  %v679_v20 = vmul.f32 %v676_v41, %v2065_v58 }
 0x121   : > { %v580_v21 = vpop.permute.xlu1 %579  ;;  %v578_v24 = vpop.permute.xlu0 %577  ;;  %1068 = vmatprep.subr.mxu1 %v679_v20 }
 0x122   : > { %v581_v25 = vsel %vm339_vm7, %v578_v24, %v580_v21  ;;  %v582_v26 = vsel %vm339_vm7, %v580_v21, %v578_v24  ;;  %1069 = vmatpush1.msra.mxu1 %v678_v19  ;;  %v1175_v21 = vld [vmem:[%s2364_s5] sm:$0x1] }
 0x123   : > { %v583_v28 = vmul.f32 %v582_v26, %v2085_v10  ;;  %v584_v22 = vmul.f32 %v581_v25, %v2089_v27  ;;  %v1136_v26 = vld [vmem:[%s2365_s6] sm:$0xff] }
 0x125   : > { %v665_v23 = vpop.permute.xlu1 %664  ;;  %v663_v31 = vpop.permute.xlu0 %662  ;;  %999 = vmatprep.subr.mxu0 %v584_v22 }
 0x126   : > { %v666_v57 = vsel %vm339_vm7, %v663_v31, %v665_v23  ;;  %v667_v58 = vsel %vm339_vm7, %v665_v23, %v663_v31  ;;  %1000 = vmatpush1.msra.mxu0 %v583_v28 }
 0x127   : > { %v668_v32 = vmul.f32 %v667_v58, %v2085_v10  ;;  %v669_v33 = vmul.f32 %v666_v57, %v2089_v27  ;;  %1399 = vmatmul.mubr.msk.f32.vlgmr.msra.gmra.mxu0 %vm823_vm8, %v2100_v15 }
 0x129   : > { %1070 = vmatprep.subr.mxu1 %v669_v33 }
 0x12a   : > { %1071 = vmatpush1.msra.mxu1 %v668_v32 }
 0x12b   : > { %1400 = vmatmul.mubr.msk.f32.vlgmr.msra.gmra.mxu1 %vm823_vm8, %v2100_v15 }
 0x132   : > { %v821_v34 = vpop.permute.xlu0 %820 }
 0x1a7   : > { %v893_v35 = vpop.f32.mrf.mxu0 }
 0x1a8   : > { %v2218_v16 = vadd.f32 %v893_v35, %v821_v34 }
 0x1a9   : > { %v895_v36 = vpop.f32.mrf.mxu0 }
 0x1aa   : > { %v2220_v11 = vadd.f32 %v895_v36, %v821_v34  ;;  %v1111_v3 = vmax.f32 %v2218_v16, 0.0 }
 0x1ab   : > { %v964_v10 = vpop.f32.mrf.mxu1 }
 0x1ac   : > { %v1112_v27 = vmax.f32 %v2220_v11, 0.0  ;;  %v2224_v1 = vadd.f32 %v964_v10, %v821_v34 }
 0x1ad   : > { %v966_v37 = vpop.f32.mrf.mxu1 }
 0x1ae   : > { %v1113_v46 = vmax.f32 %v2224_v1, 0.0  ;;  %v2227_v47 = vadd.f32 %v966_v37, %v821_v34  ;;  %v1119_v15 = vadd.f32 %v1112_v27, %v1111_v3 }
 0x1b0   : > { %v1114_v38 = vmax.f32 %v2227_v47, 0.0  ;;  %1120 = vadd.xlane.f32.xlu1 %v1119_v15 }
 0x1b2   : > { %v1162_v39 = vadd.f32 %v1114_v38, %v1113_v46 }
 0x1b4   : > { %1163 = vadd.xlane.f32.xlu0 %v1162_v39 }
 0x1e7   : > { %v1035_v40 = vpop.f32.mrf.mxu0 }
 0x1e8   : > { %v2238_v2 = vadd.f32 %v1035_v40, %v821_v34 }
 0x1e9   : > { %v1037_v42 = vpop.f32.mrf.mxu0 }
 0x1ea   : > { %v2240_v43 = vadd.f32 %v1037_v42, %v821_v34  ;;  %v1115_v61 = vmax.f32 %v2238_v2, 0.0 }
 0x1eb   : > { %v1106_v44 = vpop.f32.mrf.mxu1 }
 0x1ec   : > { %v1116_v5 = vmax.f32 %v2240_v43, 0.0  ;;  %v2244_v6 = vadd.f32 %v1106_v44, %v821_v34 }
 0x1ed   : > { %v1108_v62 = vpop.f32.mrf.mxu1 }
 0x1ee   : > { %v2246_v45 = vadd.f32 %v1108_v62, %v821_v34  ;;  %v1205_v48 = vadd.f32 %v1116_v5, %v1115_v61  ;;  %v1117_v49 = vmax.f32 %v2244_v6, 0.0 }
 0x1f0   : > { %v1118_v50 = vmax.f32 %v2246_v45, 0.0  ;;  %1206 = vadd.xlane.f32.xlu1 %v1205_v48 }
 0x1f2   : > { %v1248_v51 = vadd.f32 %v1118_v50, %v1117_v49 }
 0x1f4   : > { %1249 = vadd.xlane.f32.xlu0 %v1248_v51 }
 0x239   : > { %v1121_v8 = vpop.xlane.xlu1 %1120 }
 0x23a   : > { %v1122_v52 = vmul.f32 0.00390625, %v1121_v8 }
 0x23c   : > { %v1124_v53 = vmul.f32 %v1123_v7, %v1122_v52 }
 0x23d   : > { %v1164_v54 = vpop.xlane.xlu0 %1163 }
 0x23e   : > { %v1126_v4 = vsel %vm1125_vm9, %v1124_v53, 0.0  ;;  %v1165_v29 = vmul.f32 0.00390625, %v1164_v54  ;;  %v1218_v54 = vld [vmem:[%s2364_s5] sm:$0x1] }
 0x23f   : > { %v1127_v30 = vrot.slane %v1126_v4, 4 }
 0x240   : > { %v1167_v55 = vmul.f32 %v1165_v29, %v1123_v7 }
 0x241   : > { %v1128_v56 = vadd.f32 %v1127_v30, %v1126_v4 }
 0x242   : > { %v1168_v59 = vsel %vm1125_vm9, %v1167_v55, 0.0 }
 0x243   : > { %v1129_v60 = vrot.slane %v1128_v56, 2  ;;  %v1169_v63 = vrot.slane %v1168_v59, 4 }
 0x245   : > { %v1130_v17 = vadd.f32 %v1129_v60, %v1128_v56  ;;  %v1170_v18 = vadd.f32 %v1169_v63, %v1168_v59 }
 0x247   : > { %v1131_v9 = vrot.slane %v1130_v17, 1  ;;  %v1171_v12 = vrot.slane %v1170_v18, 2 }
 0x249   : > { %v1172_v41 = vadd.f32 %v1171_v12, %v1170_v18  ;;  %v1132_v0 = vadd.f32 %v1131_v9, %v1130_v17 }
 0x24b   : > { %v1173_v19 = vrot.slane %v1172_v41, 1  ;;  %v1134_v20 = vadd.f32 %v1133_v13, %v1132_v0  ;;  %v1145_v0 = vld [vmem:[%s2366_s7] sm:$0xff] }
 0x24d   : > { %v1135_v24 = vmax.f32 %v1134_v20, 0.0  ;;  %v1174_v25 = vadd.f32 %v1173_v19, %v1172_v41 }
 0x24f   : > { %v1140_v28 = vrot.slane %v1135_v24, %v2074_v14  ;;  %v1176_v22 = vadd.f32 %v1175_v21, %v1174_v25 }
 0x251   : > { %v1141_v23 = vmul.f32 %v1140_v28, %v1136_v26  ;;  %v1177_v31 = vmax.f32 %v1176_v22, 0.0 }
 0x253   : > { %v1142_v57 = vsel %vm1125_vm9, %v1141_v23, 0.0  ;;  %v1182_v58 = vrot.slane %v1177_v31, %v2074_v14 }
 0x254   : > { %1143 = vadd.xlane.f32.xlu1 %v1142_v57 }
 0x255   : > { %v1183_v32 = vmul.f32 %v1182_v58, %v1136_v26 }
 0x257   : > { %v1184_v33 = vsel %vm1125_vm9, %v1183_v32, 0.0 }
 0x258   : > { %1185 = vadd.xlane.f32.xlu0 %v1184_v33 }
 0x279   : > { %v1207_v34 = vpop.xlane.xlu1 %1206 }
 0x27a   : > { %v1208_v35 = vmul.f32 0.00390625, %v1207_v34 }
 0x27c   : > { %v1210_v36 = vmul.f32 %v1208_v35, %v1123_v7 }
 0x27d   : > { %v1250_v10 = vpop.xlane.xlu0 %1249 }
 0x27e   : > { %v1211_v37 = vsel %vm1125_vm9, %v1210_v36, 0.0  ;;  %v1251_v15 = vmul.f32 0.00390625, %v1250_v10 }
 0x27f   : > { %v1212_v39 = vrot.slane %v1211_v37, 4 }
 0x280   : > { %v1253_v40 = vmul.f32 %v1251_v15, %v1123_v7  ;;  %v1261_v7 = vld [vmem:[%s2364_s5] sm:$0x1] }
 0x281   : > { %v1213_v42 = vadd.f32 %v1212_v39, %v1211_v37 }
 0x282   : > { %v1254_v44 = vsel %vm1125_vm9, %v1253_v40, 0.0 }
 0x283   : > { %v1214_v62 = vrot.slane %v1213_v42, 2  ;;  %v1255_v48 = vrot.slane %v1254_v44, 4 }
 0x285   : > { %v1215_v51 = vadd.f32 %v1214_v62, %v1213_v42  ;;  %v1256_v8 = vadd.f32 %v1255_v48, %v1254_v44 }
 0x287   : > { %v1216_v52 = vrot.slane %v1215_v51, 1  ;;  %v1257_v53 = vrot.slane %v1256_v8, 2 }
 0x289   : > { %v1258_v4 = vadd.f32 %v1257_v53, %v1256_v8  ;;  %v1217_v29 = vadd.f32 %v1216_v52, %v1215_v51 }
 0x28b   : > { %v1259_v30 = vrot.slane %v1258_v4, 1  ;;  %v1219_v55 = vadd.f32 %v1218_v54, %v1217_v29 }
 0x28d   : > { %v1220_v56 = vmax.f32 %v1219_v55, 0.0  ;;  %v1260_v59 = vadd.f32 %v1259_v30, %v1258_v4 }
 0x28f   : > { %v1225_v60 = vrot.slane %v1220_v56, %v2074_v14  ;;  %v1262_v63 = vadd.f32 %v1261_v7, %v1260_v59 }
 0x291   : > { %v1226_v17 = vmul.f32 %v1225_v60, %v1136_v26  ;;  %v1263_v18 = vmax.f32 %v1262_v63, 0.0 }
 0x293   : > { %v1227_v9 = vsel %vm1125_vm9, %v1226_v17, 0.0  ;;  %v1268_v12 = vrot.slane %v1263_v18, %v2074_v14 }
 0x294   : > { %1228 = vadd.xlane.f32.xlu1 %v1227_v9 }
 0x295   : > { %v1269_v13 = vmul.f32 %v1268_v12, %v1136_v26 }
 0x297   : > { %v1270_v41 = vsel %vm1125_vm9, %v1269_v13, 0.0 }
 0x298   : > { %1271 = vadd.xlane.f32.xlu0 %v1270_v41 }
 0x2dd   : > { %v1144_v19 = vpop.xlane.xlu1 %1143 }
 0x2de   : > { %v1146_v20 = vadd.f32 %v1145_v0, %v1144_v19 }
 0x2e0   : > { %v1401_v21 = vmul.f32 -1.442695, %v1146_v20 }
 0x2e1   : > { %v1186_v24 = vpop.xlane.xlu0 %1185 }
 0x2e2   : > { %1482 = vpow2.f32 %v1401_v21  ;;  %v1188_v25 = vadd.f32 %v1186_v24, %v1145_v0 }
 0x2e4   : > { %v1402_v28 = vmul.f32 -1.442695, %v1188_v25 }
 0x2e6   : > { %1484 = vpow2.f32 %v1402_v28 }
 0x2ef   : > { %v1483_v22 = vpop.eup %1482 }
 0x2f0   : > { %v1150_v23 = vadd.f32 1.0, %v1483_v22 }
 0x2f2   : > { %1486 = vrcp.f32 %v1150_v23 }
 0x2f3   : > { %v1485_v14 = vpop.eup %1484 }
 0x2f4   : > { %v1192_v26 = vadd.f32 1.0, %v1485_v14 }
 0x2f6   : > { %1488 = vrcp.f32 %v1192_v26 }
 0x2ff   : > { %v1487_v31 = vpop.eup %1486 }
 0x300   : > { %1155 = vperm.xlu1 %1481, %v1487_v31  }
 0x303   : > { %v1489_v57 = vpop.eup %1488 }
 0x304   : > { %1197 = vperm.xlu0 %1480, %v1489_v57  }
 0x31d   : > { %v1229_v58 = vpop.xlane.xlu1 %1228 }
 0x31e   : > { %v1231_v32 = vadd.f32 %v1229_v58, %v1145_v0 }
 0x320   : > { %v1405_v33 = vmul.f32 -1.442695, %v1231_v32 }
 0x321   : > { %v1272_v34 = vpop.xlane.xlu0 %1271 }
 0x322   : > { %1490 = vpow2.f32 %v1405_v33  ;;  %v1274_v35 = vadd.f32 %v1272_v34, %v1145_v0 }
 0x324   : > { %v1408_v36 = vmul.f32 -1.442695, %v1274_v35 }
 0x326   : > { %1492 = vpow2.f32 %v1408_v36 }
 0x32f   : > { %v1491_v10 = vpop.eup %1490 }
 0x330   : > { %v1235_v37 = vadd.f32 1.0, %v1491_v10 }
 0x332   : > { %1494 = vrcp.f32 %v1235_v37 }
 0x333   : > { %v1493_v15 = vpop.eup %1492 }
 0x334   : > { %v1278_v39 = vadd.f32 1.0, %v1493_v15 }
 0x336   : > { %1496 = vrcp.f32 %v1278_v39 }
 0x33f   : > { %v1495_v40 = vpop.eup %1494 }
 0x340   : > { %1240 = vperm.xlu1 %1481, %v1495_v40  }
 0x343   : > { %v1497_v42 = vpop.eup %1496 }
 0x344   : > { %1283 = vperm.xlu1 %1481, %v1497_v42  }
 0x37b   : > { %v1156_v44 = vpop.permute.xlu1 %1155 }
 0x37c   : > { %v1158_v62 = vmul.f32 %v1156_v44, %v1111_v3  ;;  %v1159_v48 = vmul.f32 %v1156_v44, %v1112_v27 }
 0x37e   : > { %1160 = vst [vmem:[%s324_s24] sm:$0xff] %v1158_v62  ;;  %1161 = vst [vmem:[%s324_s24 + $0x8] sm:$0xff] %v1159_v48 }
 0x37f   : > { %v1198_v51 = vpop.permute.xlu0 %1197 }
 0x380   : > { %v1200_v8 = vmul.f32 %v1198_v51, %v1113_v46  ;;  %v1201_v52 = vmul.f32 %v1198_v51, %v1114_v38 }
 0x382   : > { %1403 = vst [vmem:[%s324_s24 + $0x10] sm:$0xff] %v1200_v8  ;;  %1404 = vst [vmem:[%s324_s24 + $0x18] sm:$0xff] %v1201_v52 }
 0x3bb   : > { %v1241_v53 = vpop.permute.xlu1 %1240 }
 0x3bc   : > { %v1243_v16 = vmul.f32 %v1241_v53, %v1115_v61  ;;  %v1244_v11 = vmul.f32 %v1241_v53, %v1116_v5 }
 0x3be   : > { %1406 = vst [vmem:[%s324_s24 + $0x20] sm:$0xff] %v1243_v16  ;;  %1407 = vst [vmem:[%s324_s24 + $0x28] sm:$0xff] %v1244_v11 }
 0x3bf   : > { %v1284_v3 = vpop.permute.xlu1 %1283 }
 0x3c0   : > { %v1286_v27 = vmul.f32 %v1284_v3, %v1117_v49  ;;  %v1287_v1 = vmul.f32 %v1284_v3, %v1118_v50 }
 0x3c2   : > { %1409 = vst [vmem:[%s324_s24 + $0x30] sm:$0xff] %v1286_v27  ;;  %1410 = vst [vmem:[%s324_s24 + $0x38] sm:$0xff] %v1287_v1 }
 0x3c3   : > { %1539 = shalt.err (!%p1536_p10)
}
 0x3c4   : > { %s1540_s15 = scalar_lea.hbm %s2315_s12, 1024  ;;  %s1544_s21 = scalar_lea.hbm %s2367_s8, 2048 }
 0x3c5   : > { %p1541_p0 = scmp.ne.s32.totalorder %s2315_s12, %s1540_s15  ;;  %p1545_p1 = scmp.lt.s32.totalorder %s2315_s12, %s2367_s8 }
 0x3c6   : > { %p1546_p3 = scmp.lt.s32.totalorder %s1544_s21, %s1540_s15 }
 0x3c7   : > { %p1542_p2 = pnand %p1541_p0, %p2377_p12 }
 0x3c8   : > { %p1547_p6 = por %p1546_p3, %p1545_p1 }
 0x3c9   : > { %p1543_p9 = pneg %p1542_p2 }
 0x3cb   : > { %p1548_p11 = pnand %p1547_p6, %p1543_p9 }
 0x3cd   : > { %1551 = shalt.err (!%p1548_p11)
}
 0x3ce   : > { %s1606_s19 = smov 256  }
 0x3cf   : > { %1423 = dma.vmem_to_hbm [thread:$0]  (%p2377_p12), %s2306_s16, 1024, %s2315_s12, %s1292_s9, %s1606_s19, %s1606_s19, %s1601_s25  }
 0x3d0 PF: > { %s1321_s20 = sand.u32 1, %s1578_s27   ;;  %p2378_p13 = scmp.ne.s32.totalorder %s2374_s18, 0 }
 0x3d1   : > { %p2379_p4 = scmp.ge.s32.totalorder %s1590_s30, 2  ;;  %s1322_s13 = scalar_lea.sflag [#allocation5], %s1321_s20 }
 0x3d3   : > { %p1430_p5 = pnand %p2379_p4, %p2378_p13 }
 0x3d5   : > { %p1431_p7 = pneg %p1430_p5 }
 0x3d7   : > { %1573 = dma.done.wait (%p1431_p7), %s1322_s13, 1024  }
 0x3d8   : > { %1575 = vsyncadd (%p1431_p7), %s1322_s13, 4294966272  ;;  %s2380_s17 = sld [smem:[#allocation9_spill]]  ;;  %p21_p8 = scmp.ge.s32.totalorder %s1677_s11, 4  }
 0x3d9   : > { %s2381_s27 = smov %s1582_s28  ;;  %s2382_s28 = smov %s1586_s29 }
 0x3da   : > { %s2384_s30 = smov %s1677_s11  ;;  %23 = sbr.rel (!%p21_p8) target bundleno = 5 (0x5), region = 103 }
 0x3de   : > { %s2383_s29 = smov %s2380_s17 }
 0x3df   :  { %1327 = vsyncpa [#allocation4], 1 }
 0x3e0   :  { %1329 = vsyncpa [#allocation4 + $0x1], 1 }
 0x3e1   :  { %1330 = vsyncpa [#allocation5], 1 }
 0x3e2   :  { %1332 = vsyncpa [#allocation5 + $0x1], 1 }

</bundles_post_ra>
